<compile_context>
chip_gen: v5e
topology: v5e:2x2
jax: 0.10.0
libtpu: 0.0.40
codegen_flags: <defaults>
</compile_context>

<pallas_src>
import functools

import jax
import jax.numpy as jnp
from jax.experimental import pallas as pl
from jax.experimental.pallas import tpu as pltpu


def _round_up(x, m):
    return (x + m - 1) // m * m


# ---------------------------------------------------------------------------
# Fused kernel: L synthetic TSA layers + LayerNormalization, one row tile per
# grid step.  q stays in registers/VMEM for the whole layer stack.
# ---------------------------------------------------------------------------
def _fused_tsa_kernel(alpha_ref, bias_ref, q_ref, p_ref, w1_ref, w2cat_ref,
                      o_ref, *, eps, num_layers, feat_dim):
    q = q_ref[...]                       # (tm, C) f32 residual stream
    p = p_ref[...]                       # (tm, C) bf16 (cast in wrapper; MXU-only)

    # Hoisted prev_bev projection for ALL layers in one MXU call:
    #   pw[:, l*C:(l+1)*C] == prev_bev @ W2_l     (f32 accumulation)
    pw = jnp.dot(p, w2cat_ref[...], preferred_element_type=jnp.float32)

    # Static python loop -> fully unrolled; weights already resident in VMEM.
    for l in range(num_layers):
        upd = jnp.dot(q.astype(jnp.bfloat16), w1_ref[l],
                      preferred_element_type=jnp.float32)
        upd = upd + pw[:, l * feat_dim:(l + 1) * feat_dim]
        q = q + jnp.tanh(upd)            # f32 elementwise (VPU + EUP)

    # LayerNormalization: mean over last dim, UNBIASED std (divide by C-1),
    # eps added to std (not variance), scalar alpha / bias.  All f32.
    mean = jnp.mean(q, axis=-1, keepdims=True)
    d = q - mean
    var = jnp.sum(d * d, axis=-1, keepdims=True) / (feat_dim - 1)
    std = jnp.sqrt(var)
    alpha = alpha_ref[0]
    bias = bias_ref[0]
    o_ref[...] = (alpha * d / (std + eps) + bias).astype(o_ref.dtype)


# ---------------------------------------------------------------------------
# TSA_Loop forward (single pallas_call)
# ---------------------------------------------------------------------------
def tsa_loop_forward(bev_query, prev_bev, layer_weights, alpha, bias,
                     *, eps=1e-6, tm=256):
    B, N, C = bev_query.shape
    L = len(layer_weights)
    M = B * N

    q = bev_query.reshape(M, C).astype(jnp.float32)
    p = prev_bev.reshape(M, C).astype(jnp.bfloat16)   # only ever feeds the MXU

    # Stack weights once: W1 -> (L, C, C); W2 -> (C, L*C) so the prev_bev
    # projection for every layer is a single wide matmul inside the kernel.
    w1_stack = jnp.stack([w1 for (w1, _) in layer_weights]).astype(jnp.bfloat16)
    w2_cat = jnp.concatenate([w2 for (_, w2) in layer_weights],
                             axis=1).astype(jnp.bfloat16)

    alpha = jnp.asarray(alpha, dtype=jnp.float32).reshape(1)
    bias = jnp.asarray(bias, dtype=jnp.float32).reshape(1)

    # Row tiling: tm multiple of 8, M padded up to a multiple of tm.
    tm_eff = min(_round_up(tm, 8), _round_up(M, 8))
    Mp = _round_up(M, tm_eff)
    if Mp != M:
        q = jnp.pad(q, ((0, Mp - M), (0, 0)))
        p = jnp.pad(p, ((0, Mp - M), (0, 0)))
    grid = (Mp // tm_eff,)

    # VMEM / step: q 32 KB + p 16 KB + out 32 KB (each double-buffered) +
    # ~8 KB resident bf16 weights  ->  well under the scoped default on
    # v5e/v6e/v7x.  Re-derive (vmem_limit_bytes) if scaled to production BEV
    # sizes, especially on v7x (64 MiB physical).
    kernel = functools.partial(_fused_tsa_kernel, eps=eps,
                               num_layers=L, feat_dim=C)
    out = pl.pallas_call(
        kernel,
        out_shape=jax.ShapeDtypeStruct((Mp, C), jnp.float32),
        grid_spec=pltpu.PrefetchScalarGridSpec(
            num_scalar_prefetch=0,
            grid=grid,
            in_specs=[
                pl.BlockSpec(memory_space=pltpu.MemorySpace.SMEM),   # alpha (1,)
                pl.BlockSpec(memory_space=pltpu.MemorySpace.SMEM),   # bias  (1,)
                pl.BlockSpec((tm_eff, C), lambda i: (i, 0)),         # q rows
                pl.BlockSpec((tm_eff, C), lambda i: (i, 0)),         # p rows
                pl.BlockSpec((L, C, C), lambda i: (0, 0, 0)),        # W1 stack (resident)
                pl.BlockSpec((C, L * C), lambda i: (0, 0)),          # W2 concat (resident)
            ],
            out_specs=pl.BlockSpec((tm_eff, C), lambda i: (i, 0)),
        ),
        compiler_params=pltpu.CompilerParams(
            # grid >= 2 along the row axis -> shards across v7x's 2 TensorCores
            dimension_semantics=("parallel",),
        ),
    )(alpha, bias, q, p, w1_stack, w2_cat)

    return out[:M].reshape(B, N, C)


# ---------------------------------------------------------------------------
# Pure-JAX f32 reference (same module math) for the correctness check.
# ---------------------------------------------------------------------------
def tsa_loop_reference(bev_query, prev_bev, layer_weights, alpha, bias, eps=1e-6):
    q, p = bev_query, prev_bev
    for (w1, w2) in layer_weights:
        q = q + jnp.tanh(q @ w1 + p @ w2)
    mean = jnp.mean(q, axis=-1, keepdims=True)
    d = q - mean
    std = jnp.sqrt(jnp.sum(d * d, axis=-1, keepdims=True) / (q.shape[-1] - 1))
    return alpha[0] * d / (std + eps) + bias[0]


if __name__ == "__main__":
    key = jax.random.PRNGKey(0)
    B, N, C = 2, 256, 32          # 16x16 BEV grid -> N=256 queries, embed dim 32
    n_layers = 2

    k_q, k_p, *k_ws = jax.random.split(key, 2 + 2 * n_layers)
    bev_query = jax.random.normal(k_q, (B, N, C), dtype=jnp.float32)
    prev_bev = jax.random.normal(k_p, (B, N, C), dtype=jnp.float32)

    layer_weights = []
    for li in range(n_layers):
        w1 = 0.05 * jax.random.normal(k_ws[2 * li], (C, C), dtype=jnp.float32)
        w2 = 0.05 * jax.random.normal(k_ws[2 * li + 1], (C, C), dtype=jnp.float32)
        layer_weights.append((w1, w2))

    # LayerNormalization parameters: alpha = ones(1), bias = zeros(1)
    alpha = jnp.ones((1,), dtype=jnp.float32)
    bias = jnp.zeros((1,), dtype=jnp.float32)

    out = tsa_loop_forward(bev_query, prev_bev, layer_weights, alpha, bias)
    out = jax.block_until_ready(out)

    ref = tsa_loop_reference(bev_query, prev_bev, layer_weights, alpha, bias)
    assert out.shape == (B, N, C)
    # Tolerance accounts for bf16 MXU operands (per v6e/v7x perf guidance) vs
    # the pure-f32 reference; observed error is ~1e-3 level.
    assert jnp.allclose(out, ref, atol=1e-2, rtol=1e-2), "mismatch vs reference"

    print("KERNEL_OK")
</pallas_src>

<mosaic_0001>
module attributes {stable_mosaic.version = 11 : i64} {
  func.func @_fused_tsa_kernel(%arg0: i32, %arg1: memref<1xf32, #tpu.memory_space<smem>>, %arg2: memref<1xf32, #tpu.memory_space<smem>>, %arg3: memref<256x32xf32, #tpu.memory_space<vmem>>, %arg4: memref<256x32xbf16, #tpu.memory_space<vmem>>, %arg5: memref<2x32x32xbf16, #tpu.memory_space<vmem>>, %arg6: memref<32x64xbf16, #tpu.memory_space<vmem>>, %arg7: memref<256x32xf32, #tpu.memory_space<vmem>>) attributes {dimension_semantics = [#tpu.dimension_semantics<parallel>], iteration_bounds = array<i64: 2>, scalar_prefetch = 0 : i64, scratch_operands = 0 : i64, tpu.core_type = #tpu.core_type<tc>, window_params = [{transform_indices = @transform_0, window_bounds = array<i64: 1>}, {transform_indices = @transform_1, window_bounds = array<i64: 1>}, {transform_indices = @transform_2, window_bounds = array<i64: 256, 32>}, {transform_indices = @transform_3, window_bounds = array<i64: 256, 32>}, {pipeline_mode = #tpu.pipeline_mode<synchronous>, transform_indices = @transform_4, window_bounds = array<i64: 2, 32, 32>}, {pipeline_mode = #tpu.pipeline_mode<synchronous>, transform_indices = @transform_5, window_bounds = array<i64: 32, 64>}, {transform_indices = @transform_6, window_bounds = array<i64: 256, 32>}]} {
    %c0 = arith.constant 0 : index
    %c0_0 = arith.constant 0 : index
    %0 = vector.load %arg3[%c0, %c0_0] : memref<256x32xf32, #tpu.memory_space<vmem>>, vector<256x32xf32>
    %c0_1 = arith.constant 0 : index
    %c0_2 = arith.constant 0 : index
    %1 = vector.load %arg4[%c0_1, %c0_2] : memref<256x32xbf16, #tpu.memory_space<vmem>>, vector<256x32xbf16>
    %c0_3 = arith.constant 0 : index
    %c0_4 = arith.constant 0 : index
    %2 = vector.load %arg6[%c0_3, %c0_4] : memref<32x64xbf16, #tpu.memory_space<vmem>>, vector<32x64xbf16>
    %cst = arith.constant dense<0.000000e+00> : vector<256x64xf32>
    %3 = tpu.matmul %1, %2, %cst {dimension_numbers = #tpu.dot_dimension_numbers<[1], [0], [0], [1], [0, 0, 1, 1], [], []>} : vector<256x32xbf16>, vector<32x64xbf16>, vector<256x64xf32> -> vector<256x64xf32>
    %4 = arith.truncf %0 : vector<256x32xf32> to vector<256x32xbf16>
    %c0_5 = arith.constant 0 : index
    %c0_6 = arith.constant 0 : index
    %c0_7 = arith.constant 0 : index
    %5 = vector.load %arg5[%c0_5, %c0_6, %c0_7] : memref<2x32x32xbf16, #tpu.memory_space<vmem>>, vector<1x32x32xbf16>
    %6 = vector.shape_cast %5 : vector<1x32x32xbf16> to vector<32x32xbf16>
    %cst_8 = arith.constant dense<0.000000e+00> : vector<256x32xf32>
    %7 = tpu.matmul %4, %6, %cst_8 {dimension_numbers = #tpu.dot_dimension_numbers<[1], [0], [0], [1], [0, 0, 1, 1], [], []>} : vector<256x32xbf16>, vector<32x32xbf16>, vector<256x32xf32> -> vector<256x32xf32>
    %8 = vector.extract_strided_slice %3 {offsets = [0, 0], sizes = [256, 32], strides = [1, 1]} : vector<256x64xf32> to vector<256x32xf32>
    %9 = arith.addf %7, %8 : vector<256x32xf32>
    %10 = math.tanh %9 : vector<256x32xf32>
    %11 = arith.addf %0, %10 : vector<256x32xf32>
    %12 = arith.truncf %11 : vector<256x32xf32> to vector<256x32xbf16>
    %c1 = arith.constant 1 : index
    %c0_9 = arith.constant 0 : index
    %c0_10 = arith.constant 0 : index
    %13 = vector.load %arg5[%c1, %c0_9, %c0_10] : memref<2x32x32xbf16, #tpu.memory_space<vmem>>, vector<1x32x32xbf16>
    %14 = vector.shape_cast %13 : vector<1x32x32xbf16> to vector<32x32xbf16>
    %cst_11 = arith.constant dense<0.000000e+00> : vector<256x32xf32>
    %15 = tpu.matmul %12, %14, %cst_11 {dimension_numbers = #tpu.dot_dimension_numbers<[1], [0], [0], [1], [0, 0, 1, 1], [], []>} : vector<256x32xbf16>, vector<32x32xbf16>, vector<256x32xf32> -> vector<256x32xf32>
    %16 = vector.extract_strided_slice %3 {offsets = [0, 32], sizes = [256, 32], strides = [1, 1]} : vector<256x64xf32> to vector<256x32xf32>
    %17 = arith.addf %15, %16 : vector<256x32xf32>
    %18 = math.tanh %17 : vector<256x32xf32>
    %19 = arith.addf %11, %18 : vector<256x32xf32>
    %cst_12 = arith.constant dense<0.000000e+00> : vector<256xf32>
    %20 = vector.multi_reduction <add>, %19, %cst_12 [1] : vector<256x32xf32> to vector<256xf32>
    %21 = vector.shape_cast %20 : vector<256xf32> to vector<256x1xf32>
    %cst_13 = arith.constant 3.200000e+01 : f32
    %22 = vector.broadcast %cst_13 : f32 to vector<256x1xf32>
    %23 = arith.divf %21, %22 : vector<256x1xf32>
    %24 = vector.broadcast %23 : vector<256x1xf32> to vector<256x32xf32>
    %25 = arith.subf %19, %24 : vector<256x32xf32>
    %26 = arith.mulf %25, %25 : vector<256x32xf32>
    %cst_14 = arith.constant dense<0.000000e+00> : vector<256xf32>
    %27 = vector.multi_reduction <add>, %26, %cst_14 [1] : vector<256x32xf32> to vector<256xf32>
    %28 = vector.shape_cast %27 : vector<256xf32> to vector<256x1xf32>
    %cst_15 = arith.constant 3.100000e+01 : f32
    %29 = vector.broadcast %cst_15 : f32 to vector<256x1xf32>
    %30 = arith.divf %28, %29 : vector<256x1xf32>
    %31 = math.sqrt %30 : vector<256x1xf32>
    %c0_16 = arith.constant 0 : index
    %32 = memref.load %arg1[%c0_16] : memref<1xf32, #tpu.memory_space<smem>>
    %c0_17 = arith.constant 0 : index
    %33 = memref.load %arg2[%c0_17] : memref<1xf32, #tpu.memory_space<smem>>
    %34 = vector.broadcast %32 : f32 to vector<256x32xf32>
    %35 = arith.mulf %34, %25 : vector<256x32xf32>
    %cst_18 = arith.constant 9.99999997E-7 : f32
    %36 = vector.broadcast %cst_18 : f32 to vector<256x1xf32>
    %37 = arith.addf %31, %36 : vector<256x1xf32>
    %38 = vector.broadcast %37 : vector<256x1xf32> to vector<256x32xf32>
    %39 = arith.divf %35, %38 : vector<256x32xf32>
    %40 = vector.broadcast %33 : f32 to vector<256x32xf32>
    %41 = arith.addf %39, %40 : vector<256x32xf32>
    %c0_19 = arith.constant 0 : index
    %c0_20 = arith.constant 0 : index
    %42 = vector.load %arg7[%c0_19, %c0_20] : memref<256x32xf32, #tpu.memory_space<vmem>>, vector<256x32xf32>
    tpu.vector_store %arg7[%c0_19, %c0_20], %41 {strides = array<i32>} : memref<256x32xf32, #tpu.memory_space<vmem>>, vector<256x32xf32>,
    return
  }
  func.func @transform_0(%arg0: i32) -> i32 {
    %c0_i32 = arith.constant 0 : i32
    %c0_i32_0 = arith.constant 0 : i32
    return %c0_i32 : i32
  }
  func.func @transform_1(%arg0: i32) -> i32 {
    %c0_i32 = arith.constant 0 : i32
    %c0_i32_0 = arith.constant 0 : i32
    return %c0_i32 : i32
  }
  func.func @transform_2(%arg0: i32) -> (i32, i32) {
    %c0_i32 = arith.constant 0 : i32
    %c0_i32_0 = arith.constant 0 : i32
    return %arg0, %c0_i32 : i32, i32
  }
  func.func @transform_3(%arg0: i32) -> (i32, i32) {
    %c0_i32 = arith.constant 0 : i32
    %c0_i32_0 = arith.constant 0 : i32
    return %arg0, %c0_i32 : i32, i32
  }
  func.func @transform_4(%arg0: i32) -> (i32, i32, i32) {
    %c0_i32 = arith.constant 0 : i32
    %c0_i32_0 = arith.constant 0 : i32
    %c0_i32_1 = arith.constant 0 : i32
    %c0_i32_2 = arith.constant 0 : i32
    return %c0_i32, %c0_i32_0, %c0_i32_1 : i32, i32, i32
  }
  func.func @transform_5(%arg0: i32) -> (i32, i32) {
    %c0_i32 = arith.constant 0 : i32
    %c0_i32_0 = arith.constant 0 : i32
    %c0_i32_1 = arith.constant 0 : i32
    return %c0_i32, %c0_i32_0 : i32, i32
  }
  func.func @transform_6(%arg0: i32) -> (i32, i32) {
    %c0_i32 = arith.constant 0 : i32
    %c0_i32_0 = arith.constant 0 : i32
    return %arg0, %c0_i32 : i32, i32
  }
}

</mosaic_0001>

<bundles_post_ra>
// kernel: tpu_custom_call.1
= control target key start
LH: loop header
LB: loop body
LE: loop exit
PB: predicated region body
PF: predicated region fallthrough
CT: control target
= control target key end

     0   :  { %s3075_s25 = smov 0   ;;  %s4853_s0 = inlined_call_operand.<no memory space> [shape: f32[1], index: 0, kind: input, shape index: {}]   ;;  %s4854_s1 = inlined_call_operand.<no memory space> [shape: f32[1], index: 1, kind: input, shape index: {}]   ;;  %s4855_s2 = inlined_call_operand.vmem [shape: f32[512,32], index: 2, kind: input, shape index: {}]   ;;  %s4856_s3 = inlined_call_operand.vmem [shape: bf16[512,32], index: 3, kind: input, shape index: {}]   ;;  %s4857_s4 = inlined_call_operand.vmem [shape: bf16[2,32,32], index: 4, kind: input, shape index: {}]   ;;  %s4858_s5 = inlined_call_operand.vmem [shape: bf16[32,64], index: 5, kind: input, shape index: {}]   ;;  %s4859_s6 = inlined_call_operand.vmem [shape: f32[512,32], index: 6, kind: output, shape index: {}]  }
   0x1   :  { %11 = sst [smem:[#allocation2]] %s4853_s0 }
   0x2   :  { %12 = sst [smem:[#allocation3]] %s4854_s1 }
   0x3 LB: > { %s2571_s26 = sadd.s32 4294967295, %s3029_s25   ;;  %p2575_p0 = scmp.ge.s32.totalorder %s3029_s25, 1  ;;  %s3029_s25 = sphi %s3075_s25, %s18_s25  }
   0x4   : > { %p226_p1 = scmp.lt.s32.totalorder %s3029_s25, 3 }
   0x6   : > { %p227_p2 = pnand %p2575_p0, %p226_p1 }
   0x7   : > { %s2576_s29 = sshll.u32 (!%p227_p2), %s2571_s26, 5  ;;  %s3031_s22 = smov (!%p227_p2), 96  }
   0x8   : > { %230 = sbr.rel (%p227_p2) target bundleno = 879 (0x36f), region = 44  ;;  %p262_p3 = scmp.lt.s32.totalorder (!%p227_p2), %s2576_s29, 63 }
   0x9   : > { %s1891_s23 = sld [smem:[#allocation2]] (!%p227_p2) }
   0xa   : > { %s1892_s24 = sld [smem:[#allocation3]] (!%p227_p2) }
   0xd   : > { %v2741_v0 = vld [vmem:[%s4858_s5 + $0x8] sm:$0xff]  ;;  %v2740_v2 = vld [vmem:[%s4858_s5] sm:$0xff]  ;;  %s4879_s29 = smov (!%p262_p3, %s2576_s29), 63  ;;  %vm440_vm0 = vcmask 261120   ;;  %v2745_v49 = vld [vmem:[%s4857_s4 + $0x18] sm:$0xff] }
   0xe   : > { %v2743_v1 = vld [vmem:[%s4857_s4 + $0x8] sm:$0xff]  ;;  %495 = vmatpush.bf16.msra.mxu0 %v2741_v0  ;;  %2746 = vmatpush.bf16.msra.mxu3 %v2741_v0  ;;  %v2742_v3 = vld [vmem:[%s4857_s4] sm:$0xff]  ;;  %s2579_s10 = sshll.u32 %s4879_s29, 2  ;;  %s2577_s11 = sshll.u32 %s4879_s29, 3  ;;  %v2744_v53 = vld [vmem:[%s4857_s4 + $0x10] sm:$0xff] }
   0xf   : > { %664 = vmatpush.bf16.msra.mxu1 %v2743_v1  ;;  %s3102_s14 = scalar_lea.vmem %s4856_s3, %s2579_s10  ;;  %s3109_s17 = scalar_lea.vmem %s4855_s2, %s2577_s11  ;;  %1026 = vmatpush.bf16.msra.mxu2 %v2745_v49 }
  0x10   : > { %v2724_v4 = vld [vmem:[%s3102_s14] sm:$0xff]  ;;  %v3117_v7 = vld [vmem:[%s3109_s17 + $0x8] sm:$0xff]  ;;  %v3125_v9 = vld [vmem:[%s3109_s17 + $0x10] sm:$0xff]  ;;  %s3929_s27 = scalar_lea.vmem %s4859_s6, %s2577_s11 }
  0x11   : > { %v2736_v5 = vld [vmem:[%s3102_s14 + $0x60] sm:$0xff]  ;;  %v3128_v10 = vld [vmem:[%s3109_s17 + $0x18] sm:$0xff]  ;;  %v2725_v11 = vld [vmem:[%s3102_s14 + $0x8] sm:$0xff] }
  0x12   : > { %496 = vmatpush.bf16.msra.mxu0 %v2740_v2  ;;  %2747 = vmatpush.bf16.msra.mxu3 %v2740_v2  ;;  %v3114_v6 = vld [vmem:[%s3109_s17] sm:$0xff]  ;;  %v2737_v12 = vld [vmem:[%s3102_s14 + $0x68] sm:$0xff]  ;;  %v579_v13 = vpack.c.bf16 %v3128_v10, %v3125_v9  ;;  %v2726_v16 = vld [vmem:[%s3102_s14 + $0x10] sm:$0xff] }
  0x13   : > { %665 = vmatpush.bf16.msra.mxu1 %v2742_v3  ;;  %v578_v8 = vpack.c.bf16 %v3117_v7, %v3114_v6  ;;  %v3138_v14 = vld [vmem:[%s3109_s17 + $0x20] sm:$0xff]  ;;  %v3141_v15 = vld [vmem:[%s3109_s17 + $0x28] sm:$0xff]  ;;  %v2738_v17 = vld [vmem:[%s3102_s14 + $0x70] sm:$0xff]  ;;  %1027 = vmatpush.bf16.msra.mxu2 %v2744_v53 }
  0x14   : > { %v580_v18 = vpack.c.bf16 %v3141_v15, %v3138_v14  ;;  %v3151_v19 = vld [vmem:[%s3109_s17 + $0x30] sm:$0xff]  ;;  %v3154_v20 = vld [vmem:[%s3109_s17 + $0x38] sm:$0xff]  ;;  %v3164_v24 = vld [vmem:[%s3109_s17 + $0xc0] sm:$0xff] }
  0x15   : > { %2654 = vmatmul.msk.bf16.vlgmr.msra.gmra.mxu0 %vm440_vm0, %v2724_v4  ;;  %2666 = vmatmul.msk.bf16.vlgmr.msra.gmra.mxu3 %vm440_vm0, %v2736_v5  ;;  %v2727_v21 = vld [vmem:[%s3102_s14 + $0x18] sm:$0xff]  ;;  %v581_v23 = vpack.c.bf16 %v3154_v20, %v3151_v19  ;;  %v3167_v25 = vld [vmem:[%s3109_s17 + $0xc8] sm:$0xff]  ;;  %v3170_v26 = vld [vmem:[%s3109_s17 + $0x40] sm:$0xff] }
  0x16   : > { %2748 = vmatpush.bf16.msrb.mxu3 %v2743_v1  ;;  %2678 = vmatmul.msk.bf16.vlgmr.msra.gmra.mxu1 %vm440_vm0, %v578_v8  ;;  %v2739_v22 = vld [vmem:[%s3102_s14 + $0x78] sm:$0xff]  ;;  %v3173_v27 = vld [vmem:[%s3109_s17 + $0x48] sm:$0xff]  ;;  %v2728_v28 = vld [vmem:[%s3102_s14 + $0x20] sm:$0xff]  ;;  %v590_v29 = vpack.c.bf16 %v3167_v25, %v3164_v24 }
  0x17   : > { %v582_v30 = vpack.c.bf16 %v3173_v27, %v3170_v26  ;;  %v3184_v31 = vld [vmem:[%s3109_s17 + $0xd0] sm:$0xff]  ;;  %v3187_v32 = vld [vmem:[%s3109_s17 + $0xd8] sm:$0xff]  ;;  %v2729_v35 = vld [vmem:[%s3102_s14 + $0x28] sm:$0xff] }
  0x18   : > { %v3190_v33 = vld [vmem:[%s3109_s17 + $0x50] sm:$0xff]  ;;  %v3193_v34 = vld [vmem:[%s3109_s17 + $0x58] sm:$0xff]  ;;  %v591_v36 = vpack.c.bf16 %v3187_v32, %v3184_v31  ;;  %v3204_v38 = vld [vmem:[%s3109_s17 + $0xe0] sm:$0xff] }
  0x19   : > { %v583_v37 = vpack.c.bf16 %v3193_v34, %v3190_v33  ;;  %v3207_v39 = vld [vmem:[%s3109_s17 + $0xe8] sm:$0xff]  ;;  %v3210_v40 = vld [vmem:[%s3109_s17 + $0x60] sm:$0xff]  ;;  %v2730_v42 = vld [vmem:[%s3102_s14 + $0x30] sm:$0xff] }
  0x1a   : > { %2749 = vmatpush.bf16.msrb.mxu3 %v2742_v3  ;;  %v3213_v41 = vld [vmem:[%s3109_s17 + $0x68] sm:$0xff]  ;;  %v592_v43 = vpack.c.bf16 %v3207_v39, %v3204_v38  ;;  %v3224_v45 = vld [vmem:[%s3109_s17 + $0xf0] sm:$0xff]  ;;  %v3227_v46 = vld [vmem:[%s3109_s17 + $0xf8] sm:$0xff] }
  0x1b   : > { %v584_v44 = vpack.c.bf16 %v3213_v41, %v3210_v40  ;;  %v3230_v47 = vld [vmem:[%s3109_s17 + $0x70] sm:$0xff]  ;;  %v3233_v48 = vld [vmem:[%s3109_s17 + $0x78] sm:$0xff]  ;;  %v593_v51 = vpack.c.bf16 %v3227_v46, %v3224_v45  ;;  %v3250_v54 = vld [vmem:[%s3109_s17 + $0x80] sm:$0xff] }
  0x1c   : > { %v2731_v50 = vld [vmem:[%s3102_s14 + $0x38] sm:$0xff]  ;;  %v585_v52 = vpack.c.bf16 %v3233_v48, %v3230_v47  ;;  %v3253_v55 = vld [vmem:[%s3109_s17 + $0x88] sm:$0xff]  ;;  %v2732_v56 = vld [vmem:[%s3102_s14 + $0x40] sm:$0xff] }
  0x1d   : > { %v586_v58 = vpack.c.bf16 %v3253_v55, %v3250_v54  ;;  %v3268_v2 = vld [vmem:[%s3109_s17 + $0x90] sm:$0xff]  ;;  %v3271_v3 = vld [vmem:[%s3109_s17 + $0x98] sm:$0xff]  ;;  %v2733_v4 = vld [vmem:[%s3102_s14 + $0x48] sm:$0xff] }
  0x1e   : > { %2750 = vmatpush.bf16.msra.mxu3 %v2745_v49 }
  0x22   : > { %2751 = vmatpush.bf16.msra.mxu3 %v2744_v53 }
  0x25   : > { %2655 = vmatmul.msk.bf16.gmra.mxu0 %vm440_vm0, %v2725_v11  ;;  %2667 = vmatmul.msk.bf16.gmra.mxu3 %vm440_vm0, %v2737_v12  ;;  %v587_v11 = vpack.c.bf16 %v3271_v3, %v3268_v2 }
  0x26   : > { %2679 = vmatmul.msk.bf16.gmra.mxu1 %vm440_vm0, %v579_v13 }
  0x35   : > { %2656 = vmatmul.msk.bf16.gmra.mxu0 %vm440_vm0, %v2726_v16  ;;  %2668 = vmatmul.msk.bf16.gmra.mxu3 %vm440_vm0, %v2738_v17 }
  0x36   : > { %2680 = vmatmul.msk.bf16.gmra.mxu1 %vm440_vm0, %v580_v18 }
  0x45   : > { %2657 = vmatmul.msk.bf16.gmra.mxu0 %vm440_vm0, %v2727_v21  ;;  %2669 = vmatmul.msk.bf16.gmra.mxu3 %vm440_vm0, %v2739_v22 }
  0x46   : > { %2681 = vmatmul.msk.bf16.gmra.mxu1 %vm440_vm0, %v581_v23 }
  0x55   : > { %2658 = vmatmul.msk.bf16.gmra.mxu0 %vm440_vm0, %v2728_v28  ;;  %2690 = vmatmul.msk.bf16.vlgmr.msrb.gmra.mxu3 %vm440_vm0, %v590_v29  ;;  %v3298_v29 = vld [vmem:[%s3109_s17 + $0xa0] sm:$0xff] }
  0x56   : > { %2682 = vmatmul.msk.bf16.gmra.mxu1 %vm440_vm0, %v582_v30  ;;  %v3301_v30 = vld [vmem:[%s3109_s17 + $0xa8] sm:$0xff] }
  0x65   : > { %2659 = vmatmul.msk.bf16.gmra.mxu0 %vm440_vm0, %v2729_v35  ;;  %2691 = vmatmul.msk.bf16.gmra.mxu3 %vm440_vm0, %v591_v36  ;;  %v2734_v35 = vld [vmem:[%s3102_s14 + $0x50] sm:$0xff] }
  0x66   : > { %2683 = vmatmul.msk.bf16.gmra.mxu1 %vm440_vm0, %v583_v37 }
  0x75   : > { %2660 = vmatmul.msk.bf16.gmra.mxu0 %vm440_vm0, %v2730_v42  ;;  %2692 = vmatmul.msk.bf16.gmra.mxu3 %vm440_vm0, %v592_v43  ;;  %v588_v42 = vpack.c.bf16 %v3301_v30, %v3298_v29 }
  0x76   : > { %2684 = vmatmul.msk.bf16.gmra.mxu1 %vm440_vm0, %v584_v44 }
  0x85   : > { %2661 = vmatmul.msk.bf16.gmra.mxu0 %vm440_vm0, %v2731_v50  ;;  %2693 = vmatmul.msk.bf16.gmra.mxu3 %vm440_vm0, %v593_v51 }
  0x86   : > { %2685 = vmatmul.msk.bf16.gmra.mxu1 %vm440_vm0, %v585_v52 }
  0x92   : > { %v498_v57 = vpop.f32.mrf.mxu0 }
  0x93   : > { %876 = vrot.lane.b32.xlu0 %v498_v57, %s3031_s22  ;;  %v667_v59 = vpop.f32.mrf.mxu1 }
  0x94   : > { %v668_v61 = vadd.f32 %v667_v59, %v498_v57  ;;  %v3332_v59 = vld [vmem:[%s3109_s17 + $0xb8] sm:$0xff] }
  0x95   : > { %2662 = vmatmul.msk.bf16.gmra.mxu0 %vm440_vm0, %v2732_v56 }
  0x96   : > { %2686 = vmatmul.msk.bf16.gmra.mxu1 %vm440_vm0, %v586_v58  ;;  %2763 = vtanh.f32 %v668_v61  ;;  %v3329_v58 = vld [vmem:[%s3109_s17 + $0xb0] sm:$0xff]  ;;  %v2735_v61 = vld [vmem:[%s3102_s14 + $0x58] sm:$0xff] }
  0x98   : > { %v3261_v60 = vpop.f32.mrf.mxu3 }
  0x9a   : > { %v500_v62 = vpop.f32.mrf.mxu0 }
  0x9b   : > { %924 = vrot.lane.b32.xlu0 %v3261_v60, %s3031_s22  ;;  %v669_v63 = vpop.f32.mrf.mxu1 }
  0x9c   : > { %v670_v0 = vadd.f32 %v669_v63, %v500_v62  ;;  %v2764_v8 = vpop.eup %2763 }
  0x9d   : > { %v3281_v16 = vadd.f32 %v2764_v8, %v3114_v6 }
  0x9e   : > { %2765 = vtanh.f32 %v670_v0  ;;  %v589_v0 = vpack.c.bf16 %v3332_v59, %v3329_v58 }
  0xa0   : > { %v3265_v1 = vpop.f32.mrf.mxu3 }
  0xa1   : > { %926 = vrot.lane.b32.xlu1 %v3265_v1, %s3031_s22 }
  0xa2   : > { %v503_v5 = vpop.f32.mrf.mxu0 }
  0xa3   : > { %878 = vrot.lane.b32.xlu0 %v500_v62, %s3031_s22  ;;  %v672_v12 = vpop.f32.mrf.mxu1 }
  0xa4   : > { %v2766_v13 = vpop.eup %2765  ;;  %v673_v22 = vadd.f32 %v672_v12, %v503_v5 }
  0xa5   : > { %2663 = vmatmul.msk.bf16.gmra.mxu0 %vm440_vm0, %v2733_v4  ;;  %v3284_v17 = vadd.f32 %v2766_v13, %v3117_v7 }
  0xa6   : > { %2687 = vmatmul.msk.bf16.gmra.mxu1 %vm440_vm0, %v587_v11  ;;  %2767 = vtanh.f32 %v673_v22 }
  0xa7   : > { %v811_v21 = vpack.c.bf16 %v3284_v17, %v3281_v16 }
  0xa8   : > { %v3287_v18 = vpop.f32.mrf.mxu3 }
  0xa9   : > { %880 = vrot.lane.b32.xlu1 %v503_v5, %s3031_s22  ;;  %928 = vrot.lane.b32.xlu2 %v3287_v18, %s3031_s22 }
  0xaa   : > { %2706 = vmatmul.msk.bf16.vlgmr.msra.gmra.mxu2 %vm440_vm0, %v811_v21  ;;  %v505_v6 = vpop.f32.mrf.mxu0 }
  0xab   : > { %v674_v23 = vpop.f32.mrf.mxu1 }
  0xac   : > { %v675_v7 = vadd.f32 %v674_v23, %v505_v6  ;;  %v2768_v37 = vpop.eup %2767 }
  0xad   : > { %v3312_v49 = vadd.f32 %v2768_v37, %v3125_v9 }
  0xae   : > { %2769 = vtanh.f32 %v675_v7 }
  0xb0   : > { %v3295_v28 = vpop.f32.mrf.mxu3 }
  0xb1   : > { %882 = vrot.lane.b32.xlu1 %v505_v6, %s3031_s22  ;;  %930 = vrot.lane.b32.xlu0 %v3295_v28, %s3031_s22 }
  0xb2   : > { %v508_v36 = vpop.f32.mrf.mxu0 }
  0xb3   : > { %884 = vrot.lane.b32.xlu2 %v508_v36, %s3031_s22  ;;  %v677_v43 = vpop.f32.mrf.mxu1 }
  0xb4   : > { %v2770_v44 = vpop.eup %2769  ;;  %v678_v53 = vadd.f32 %v677_v43, %v508_v36 }
  0xb5   : > { %2664 = vmatmul.msk.bf16.gmra.mxu0 %vm440_vm0, %v2734_v35  ;;  %v3315_v50 = vadd.f32 %v2770_v44, %v3128_v10 }
  0xb6   : > { %2688 = vmatmul.msk.bf16.gmra.mxu1 %vm440_vm0, %v588_v42  ;;  %2771 = vtanh.f32 %v678_v53 }
  0xb7   : > { %v812_v52 = vpack.c.bf16 %v3315_v50, %v3312_v49 }
  0xb8   : > { %v3318_v51 = vpop.f32.mrf.mxu3 }
  0xb9   : > { %932 = vrot.lane.b32.xlu1 %v3318_v51, %s3031_s22 }
  0xba   : > { %2707 = vmatmul.msk.bf16.gmra.mxu2 %vm440_vm0, %v812_v52  ;;  %v510_v9 = vpop.f32.mrf.mxu0 }
  0xbb   : > { %886 = vrot.lane.b32.xlu2 %v510_v9, %s3031_s22  ;;  %v679_v56 = vpop.f32.mrf.mxu1 }
  0xbc   : > { %v680_v10 = vadd.f32 %v679_v56, %v510_v9  ;;  %v2772_v63 = vpop.eup %2771 }
  0xbd   : > { %v3342_v8 = vadd.f32 %v2772_v63, %v3138_v14 }
  0xbe   : > { %2773 = vtanh.f32 %v680_v10 }
  0xc0   : > { %v3326_v57 = vpop.f32.mrf.mxu3 }
  0xc2   : > { %v513_v62 = vpop.f32.mrf.mxu0 }
  0xc3   : > { %888 = vrot.lane.b32.xlu0 %v513_v62, %s3031_s22  ;;  %934 = vrot.lane.b32.xlu2 %v3326_v57, %s3031_s22  ;;  %v682_v4 = vpop.f32.mrf.mxu1 }
  0xc4   : > { %v2774_v5 = vpop.eup %2773  ;;  %v683_v21 = vadd.f32 %v682_v4, %v513_v62 }
  0xc5   : > { %2665 = vmatmul.msk.bf16.gmra.mxu0 %vm440_vm0, %v2735_v61  ;;  %v3345_v11 = vadd.f32 %v2774_v5, %v3141_v15 }
  0xc6   : > { %2689 = vmatmul.msk.bf16.gmra.mxu1 %vm440_vm0, %v589_v0  ;;  %2775 = vtanh.f32 %v683_v21 }
  0xc7   : > { %v813_v13 = vpack.c.bf16 %v3345_v11, %v3342_v8 }
  0xc8   : > { %v3348_v12 = vpop.f32.mrf.mxu3 }
  0xca   : > { %2708 = vmatmul.msk.bf16.gmra.mxu2 %vm440_vm0, %v813_v13  ;;  %v515_v22 = vpop.f32.mrf.mxu0 }
  0xcb   : > { %890 = vrot.lane.b32.xlu1 %v515_v22, %s3031_s22  ;;  %936 = vrot.lane.b32.xlu0 %v3348_v12, %s3031_s22  ;;  %v684_v14 = vpop.f32.mrf.mxu1 }
  0xcc   : > { %v685_v15 = vadd.f32 %v684_v14, %v515_v22  ;;  %v2776_v7 = vpop.eup %2775 }
  0xcd   : > { %v3362_v37 = vadd.f32 %v2776_v7, %v3151_v19 }
  0xce   : > { %2777 = vtanh.f32 %v685_v15 }
  0xd0   : > { %v3356_v6 = vpop.f32.mrf.mxu3 }
  0xd2   : > { %v518_v23 = vpop.f32.mrf.mxu0 }
  0xd3   : > { %892 = vrot.lane.b32.xlu2 %v518_v23, %s3031_s22  ;;  %938 = vrot.lane.b32.xlu1 %v3356_v6, %s3031_s22  ;;  %v687_v35 = vpop.f32.mrf.mxu1 }
  0xd4   : > { %v2778_v36 = vpop.eup %2777  ;;  %v688_v52 = vadd.f32 %v687_v35, %v518_v23 }
  0xd5   : > { %v3365_v42 = vadd.f32 %v2778_v36, %v3154_v20 }
  0xd6   : > { %2779 = vtanh.f32 %v688_v52 }
  0xd7   : > { %v814_v44 = vpack.c.bf16 %v3365_v42, %v3362_v37 }
  0xd8   : > { %v727_v43 = vpop.f32.mrf.mxu3 }
  0xd9   : > { %v728_v53 = vadd.f32 %v727_v43, %v3261_v60 }
  0xda   : > { %2709 = vmatmul.msk.bf16.gmra.mxu2 %vm440_vm0, %v814_v44  ;;  %v520_v9 = vpop.f32.mrf.mxu0 }
  0xdb   : > { %894 = vrot.lane.b32.xlu0 %v520_v9, %s3031_s22  ;;  %v689_v56 = vpop.f32.mrf.mxu1  ;;  %2781 = vtanh.f32 %v728_v53 }
  0xdc   : > { %v690_v10 = vadd.f32 %v689_v56, %v520_v9  ;;  %v2780_v62 = vpop.eup %2779 }
  0xdd   : > { %v3375_v4 = vadd.f32 %v2780_v62, %v3170_v26 }
  0xde   : > { %2783 = vtanh.f32 %v690_v10 }
  0xe0   : > { %v729_v19 = vpop.f32.mrf.mxu3 }
  0xe1   : > { %v730_v20 = vadd.f32 %v729_v19, %v3265_v1  ;;  %v2782_v63 = vpop.eup %2781 }
  0xe2   : > { %v523_v61 = vpop.f32.mrf.mxu0  ;;  %v3381_v13 = vadd.f32 %v2782_v63, %v3164_v24 }
  0xe3   : > { %2785 = vtanh.f32 %v730_v20  ;;  %896 = vrot.lane.b32.xlu1 %v523_v61, %s3031_s22  ;;  %v692_v60 = vpop.f32.mrf.mxu1 }
  0xe4   : > { %v2784_v0 = vpop.eup %2783  ;;  %v693_v14 = vadd.f32 %v692_v60, %v523_v61 }
  0xe5   : > { %v3378_v5 = vadd.f32 %v2784_v0, %v3173_v27 }
  0xe6   : > { %2787 = vtanh.f32 %v693_v14 }
  0xe7   : > { %v815_v1 = vpack.c.bf16 %v3378_v5, %v3375_v4 }
  0xe8   : > { %v732_v21 = vpop.f32.mrf.mxu3 }
  0xe9   : > { %v2786_v22 = vpop.eup %2785  ;;  %v733_v23 = vadd.f32 %v732_v21, %v3287_v18 }
  0xea   : > { %v3386_v15 = vadd.f32 %v2786_v22, %v3167_v25  ;;  %2710 = vmatmul.msk.bf16.gmra.mxu2 %vm440_vm0, %v815_v1  ;;  %v525_v26 = vpop.f32.mrf.mxu0 }
  0xeb   : > { %898 = vrot.lane.b32.xlu2 %v525_v26, %s3031_s22  ;;  %v694_v27 = vpop.f32.mrf.mxu1  ;;  %2789 = vtanh.f32 %v733_v23 }
  0xec   : > { %v823_v24 = vpack.c.bf16 %v3386_v15, %v3381_v13  ;;  %v695_v7 = vadd.f32 %v694_v27, %v525_v26  ;;  %v2788_v18 = vpop.eup %2787 }
  0xed   : > { %v3397_v53 = vadd.f32 %v2788_v18, %v3190_v33 }
  0xee   : > { %2718 = vmatmul.msk.bf16.vlgmr.msra.gmra.mxu3 %vm440_vm0, %v823_v24  ;;  %2791 = vtanh.f32 %v695_v7 }
  0xf0   : > { %v734_v35 = vpop.f32.mrf.mxu3 }
  0xf1   : > { %v735_v25 = vadd.f32 %v734_v35, %v3295_v28  ;;  %v2790_v43 = vpop.eup %2789 }
  0xf2   : > { %v528_v36 = vpop.f32.mrf.mxu0  ;;  %v3405_v28 = vadd.f32 %v2790_v43, %v3184_v31 }
  0xf3   : > { %2793 = vtanh.f32 %v735_v25  ;;  %900 = vrot.lane.b32.xlu0 %v528_v36, %s3031_s22  ;;  %v697_v44 = vpop.f32.mrf.mxu1 }
  0xf4   : > { %v2792_v52 = vpop.eup %2791  ;;  %v698_v20 = vadd.f32 %v697_v44, %v528_v36 }
  0xf5   : > { %v3400_v9 = vadd.f32 %v2792_v52, %v3193_v34 }
  0xf6   : > { %2795 = vtanh.f32 %v698_v20 }
  0xf7   : > { %v816_v10 = vpack.c.bf16 %v3400_v9, %v3397_v53 }
  0xf8   : > { %v737_v56 = vpop.f32.mrf.mxu3 }
  0xf9   : > { %v2794_v19 = vpop.eup %2793  ;;  %v738_v61 = vadd.f32 %v737_v56, %v3318_v51 }
  0xfa   : > { %2711 = vmatmul.msk.bf16.gmra.mxu2 %vm440_vm0, %v816_v10  ;;  %v530_v62 = vpop.f32.mrf.mxu0  ;;  %v3410_v33 = vadd.f32 %v2794_v19, %v3187_v32 }
  0xfb   : > { %902 = vrot.lane.b32.xlu1 %v530_v62, %s3031_s22  ;;  %v699_v34 = vpop.f32.mrf.mxu1  ;;  %2797 = vtanh.f32 %v738_v61 }
  0xfc   : > { %v824_v63 = vpack.c.bf16 %v3410_v33, %v3405_v28  ;;  %v700_v60 = vadd.f32 %v699_v34, %v530_v62  ;;  %v2796_v21 = vpop.eup %2795 }
  0xfd   : > { %v3419_v14 = vadd.f32 %v2796_v21, %v3210_v40 }
  0xfe   : > { %2719 = vmatmul.msk.bf16.gmra.mxu3 %vm440_vm0, %v824_v63  ;;  %2799 = vtanh.f32 %v700_v60 }
 0x100   : > { %v739_v31 = vpop.f32.mrf.mxu3 }
 0x101   : > { %v740_v51 = vadd.f32 %v739_v31, %v3326_v57  ;;  %v2798_v32 = vpop.eup %2797 }
 0x102   : > { %v533_v0 = vpop.f32.mrf.mxu0  ;;  %v3427_v57 = vadd.f32 %v2798_v32, %v3204_v38 }
 0x103   : > { %2801 = vtanh.f32 %v740_v51  ;;  %904 = vrot.lane.b32.xlu2 %v533_v0, %s3031_s22  ;;  %v702_v1 = vpop.f32.mrf.mxu1 }
 0x104   : > { %v2800_v22 = vpop.eup %2799  ;;  %v703_v7 = vadd.f32 %v702_v1, %v533_v0 }
 0x105   : > { %v3422_v23 = vadd.f32 %v2800_v22, %v3213_v41 }
 0x106   : > { %2803 = vtanh.f32 %v703_v7 }
 0x107   : > { %v817_v24 = vpack.c.bf16 %v3422_v23, %v3419_v14 }
 0x108   : > { %v742_v26 = vpop.f32.mrf.mxu3 }
 0x109   : > { %v2802_v27 = vpop.eup %2801  ;;  %v743_v35 = vadd.f32 %v742_v26, %v3348_v12 }
 0x10a   : > { %2712 = vmatmul.msk.bf16.gmra.mxu2 %vm440_vm0, %v817_v24  ;;  %v535_v25 = vpop.f32.mrf.mxu0  ;;  %v3432_v40 = vadd.f32 %v2802_v27, %v3207_v39 }
 0x10b   : > { %906 = vrot.lane.b32.xlu0 %v535_v25, %s3031_s22  ;;  %v704_v41 = vpop.f32.mrf.mxu1  ;;  %2805 = vtanh.f32 %v743_v35 }
 0x10c   : > { %v825_v36 = vpack.c.bf16 %v3432_v40, %v3427_v57  ;;  %v705_v18 = vadd.f32 %v704_v41, %v535_v25  ;;  %v2804_v44 = vpop.eup %2803 }
 0x10d   : > { %v3441_v10 = vadd.f32 %v2804_v44, %v3230_v47 }
 0x10e   : > { %2720 = vmatmul.msk.bf16.gmra.mxu3 %vm440_vm0, %v825_v36  ;;  %2807 = vtanh.f32 %v705_v18 }
 0x110   : > { %v744_v38 = vpop.f32.mrf.mxu3 }
 0x111   : > { %v745_v12 = vadd.f32 %v744_v38, %v3356_v6  ;;  %v2806_v39 = vpop.eup %2805 }
 0x112   : > { %v538_v43 = vpop.f32.mrf.mxu0  ;;  %v3449_v61 = vadd.f32 %v2806_v39, %v3224_v45 }
 0x113   : > { %2809 = vtanh.f32 %v745_v12  ;;  %908 = vrot.lane.b32.xlu1 %v538_v43, %s3031_s22  ;;  %v707_v52 = vpop.f32.mrf.mxu1 }
 0x114   : > { %v2808_v56 = vpop.eup %2807  ;;  %v708_v62 = vadd.f32 %v707_v52, %v538_v43  ;;  %v877_v43 = vpop.permute.xlu0 %876 }
 0x115   : > { %v3444_v19 = vadd.f32 %v2808_v56, %v3233_v48 }
 0x116   : > { %2811 = vtanh.f32 %v708_v62 }
 0x117   : > { %v818_v20 = vpack.c.bf16 %v3444_v19, %v3441_v10 }
 0x119   : > { %v2810_v6 = vpop.eup %2809 }
 0x11a   : > { %2713 = vmatmul.msk.bf16.gmra.mxu2 %vm440_vm0, %v818_v20  ;;  %v540_v34 = vpop.f32.mrf.mxu0  ;;  %v3453_v63 = vadd.f32 %v2810_v6, %v3227_v46  ;;  %v3481_v20 = vpop.permute.xlu2 %928 }
 0x11b   : > { %910 = vrot.lane.b32.xlu2 %v540_v34, %s3031_s22  ;;  %v709_v47 = vpop.f32.mrf.mxu1 }
 0x11c   : > { %v826_v48 = vpack.c.bf16 %v3453_v63, %v3449_v61  ;;  %v710_v60 = vadd.f32 %v709_v47, %v540_v34  ;;  %v2812_v31 = vpop.eup %2811  ;;  %v3486_v34 = vpop.permute.xlu0 %924 }
 0x11d   : > { %v3461_v46 = vadd.f32 %v2812_v31, %v3250_v54 }
 0x11e   : > { %2721 = vmatmul.msk.bf16.gmra.mxu3 %vm440_vm0, %v826_v48  ;;  %2813 = vtanh.f32 %v710_v60 }
 0x122   : > { %v543_v45 = vpop.f32.mrf.mxu0 }
 0x123   : > { %912 = vrot.lane.b32.xlu0 %v543_v45, %s3031_s22  ;;  %v712_v51 = vpop.f32.mrf.mxu1 }
 0x124   : > { %v2814_v0 = vpop.eup %2813  ;;  %v713_v1 = vadd.f32 %v712_v51, %v543_v45 }
 0x125   : > { %v3464_v21 = vadd.f32 %v2814_v0, %v3253_v55 }
 0x126   : > { %2815 = vtanh.f32 %v713_v1 }
 0x127   : > { %v819_v32 = vpack.c.bf16 %v3464_v21, %v3461_v46 }
 0x12a   : > { %2714 = vmatmul.msk.bf16.gmra.mxu2 %vm440_vm0, %v819_v32  ;;  %v545_v22 = vpop.f32.mrf.mxu0  ;;  %v885_v32 = vpop.permute.xlu2 %884 }
 0x12b   : > { %914 = vrot.lane.b32.xlu1 %v545_v22, %s3031_s22  ;;  %v714_v26 = vpop.f32.mrf.mxu1 }
 0x12c   : > { %v715_v24 = vadd.f32 %v714_v26, %v545_v22  ;;  %v2816_v54 = vpop.eup %2815 }
 0x12d   : > { %v1029_v27 = vpop.f32.mrf.mxu2  ;;  %v3472_v41 = vadd.f32 %v2816_v54, %v3268_v2 }
 0x12e   : > { %2817 = vtanh.f32 %v715_v24  ;;  %v1030_v31 = vadd.f32 %v1029_v27, %v877_v43 }
 0x132   : > { %v548_v7 = vpop.f32.mrf.mxu0 }
 0x133   : > { %916 = vrot.lane.b32.xlu2 %v548_v7, %s3031_s22  ;;  %v717_v55 = vpop.f32.mrf.mxu1 }
 0x134   : > { %v2818_v35 = vpop.eup %2817  ;;  %v718_v38 = vadd.f32 %v717_v55, %v548_v7 }
 0x135   : > { %v1031_v25 = vpop.f32.mrf.mxu2  ;;  %v3475_v36 = vadd.f32 %v2818_v35, %v3271_v3 }
 0x136   : > { %2819 = vtanh.f32 %v718_v38 }
 0x137   : > { %v820_v18 = vpack.c.bf16 %v3475_v36, %v3472_v41 }
 0x13a   : > { %2715 = vmatmul.msk.bf16.gmra.mxu2 %vm440_vm0, %v820_v18  ;;  %v550_v12 = vpop.f32.mrf.mxu0 }
 0x13b   : > { %918 = vrot.lane.b32.xlu0 %v550_v12, %s3031_s22  ;;  %v719_v44 = vpop.f32.mrf.mxu1 }
 0x13c   : > { %v720_v39 = vadd.f32 %v719_v44, %v550_v12  ;;  %v2820_v56 = vpop.eup %2819 }
 0x13d   : > { %v1034_v52 = vpop.f32.mrf.mxu2  ;;  %v3489_v47 = vadd.f32 %v2820_v56, %v3298_v29  ;;  %v3499_v29 = vpop.permute.xlu1 %926 }
 0x13e   : > { %2821 = vtanh.f32 %v720_v39 }
 0x142   : > { %v553_v2 = vpop.f32.mrf.mxu0 }
 0x143   : > { %920 = vrot.lane.b32.xlu1 %v553_v2, %s3031_s22  ;;  %v722_v3 = vpop.f32.mrf.mxu1 }
 0x144   : > { %v2822_v6 = vpop.eup %2821  ;;  %v723_v60 = vadd.f32 %v722_v3, %v553_v2 }
 0x145   : > { %v3484_v62 = vpop.f32.mrf.mxu2  ;;  %v3492_v48 = vadd.f32 %v2822_v6, %v3301_v30  ;;  %v879_v30 = vpop.permute.xlu0 %878 }
 0x146   : > { %2823 = vtanh.f32 %v723_v60  ;;  %v1032_v7 = vadd.f32 %v1031_v25, %v879_v30  ;;  %v881_v44 = vpop.permute.xlu1 %880  ;;  %v887_v25 = vpop.permute.xlu2 %886 }
 0x147   : > { %v821_v45 = vpack.c.bf16 %v3492_v48, %v3489_v47  ;;  %2825 = vtanh.f32 %v1030_v31  ;;  %v1035_v39 = vadd.f32 %v1034_v52, %v881_v44 }
 0x14a   : > { %2716 = vmatmul.msk.bf16.gmra.mxu2 %vm440_vm0, %v821_v45  ;;  %v555_v51 = vpop.f32.mrf.mxu0 }
 0x14b   : > { %v724_v0 = vpop.f32.mrf.mxu1 }
 0x14c   : > { %v725_v1 = vadd.f32 %v724_v0, %v555_v51  ;;  %v2824_v24 = vpop.eup %2823 }
 0x14d   : > { %v1039_v22 = vpop.f32.mrf.mxu2  ;;  %v2826_v54 = vpop.eup %2825  ;;  %v3502_v27 = vadd.f32 %v2824_v24, %v3329_v58 }
 0x14e   : > { %v3497_v26 = vadd.f32 %v1039_v22, %v885_v32  ;;  %2827 = vtanh.f32 %v725_v1  ;;  %v3508_v38 = vadd.f32 %v2826_v54, %v3281_v16  ;;  %v3510_v12 = vpop.permute.xlu0 %930  ;;  %v3520_v6 = vpop.permute.xlu2 %934 }
 0x14f   : > { %2829 = vtanh.f32 %v1032_v7 }
 0x150   : > { %v1173_v2 = vsel %vm440_vm0, %v3508_v38, 0.0  ;;  %2831 = vtanh.f32 %v1035_v39 }
 0x154   : > { %v2828_v55 = vpop.eup %2827 }
 0x155   : > { %v1041_v35 = vpop.f32.mrf.mxu2  ;;  %v3505_v18 = vadd.f32 %v2828_v55, %v3332_v59  ;;  %v2830_v59 = vpop.eup %2829 }
 0x156   : > { %v1042_v58 = vadd.f32 %v1041_v35, %v887_v25  ;;  %v3518_v16 = vadd.f32 %v2830_v59, %v3284_v17  ;;  %v889_v3 = vpop.permute.xlu0 %888  ;;  %v2832_v45 = vpop.eup %2831 }
 0x157   : > { %v822_v43 = vpack.c.bf16 %v3505_v18, %v3502_v27  ;;  %v3527_v32 = vadd.f32 %v2832_v45, %v3312_v49  ;;  %v893_v7 = vpop.permute.xlu2 %892 }
 0x158   : > { %2833 = vtanh.f32 %v1042_v58  ;;  %v1176_v52 = vsel %vm440_vm0, %v3518_v16, 0.0 }
 0x159   : > { %v1179_v22 = vsel %vm440_vm0, %v3527_v32, 0.0 }
 0x15a   : > { %2717 = vmatmul.msk.bf16.gmra.mxu2 %vm440_vm0, %v822_v43 }
 0x15c   : > { %1174 = vadd.xlane.f32.xlu2 %v1173_v2 }
 0x15d   : > { %v1044_v56 = vpop.f32.mrf.mxu2 }
 0x15e   : > { %v1045_v60 = vadd.f32 %v1044_v56, %v889_v3  ;;  %v2834_v31 = vpop.eup %2833  ;;  %v3532_v17 = vpop.permute.xlu0 %936 }
 0x15f   : > { %v3530_v1 = vadd.f32 %v2834_v31, %v3345_v11  ;;  %v899_v31 = vpop.permute.xlu2 %898 }
 0x160   : > { %2835 = vtanh.f32 %v1045_v60 }
 0x161   : > { %v1188_v30 = vsel %vm440_vm0, %v3530_v1, 0.0 }
 0x165   : > { %v3524_v0 = vpop.f32.mrf.mxu2  ;;  %1177 = vadd.xlane.f32.xlu0 %v1176_v52 }
 0x166   : > { %v2836_v24 = vpop.eup %2835  ;;  %v895_v44 = vpop.permute.xlu0 %894 }
 0x167   : > { %v3539_v49 = vadd.f32 %v2836_v24, %v3362_v37 }
 0x169   : > { %v1191_v43 = vsel %vm440_vm0, %v3539_v49, 0.0 }
 0x16d   : > { %v1049_v54 = vpop.f32.mrf.mxu2  ;;  %1180 = vadd.xlane.f32.xlu1 %v1179_v22  ;;  %1189 = vadd.xlane.f32.xlu0 %v1188_v30  ;;  %v883_v30 = vpop.permute.xlu1 %882 }
 0x16e   : > { %v1050_v55 = vadd.f32 %v1049_v54, %v893_v7 }
 0x170   : > { %2837 = vtanh.f32 %v1050_v55 }
 0x171   : > { %v1089_v11 = vpop.f32.mrf.mxu3 }
 0x172   : > { %v1090_v35 = vadd.f32 %v1089_v11, %v3486_v34  ;;  %v1037_v11 = vadd.f32 %v3484_v62, %v883_v30 }
 0x174   : > { %2839 = vtanh.f32 %v1090_v35  ;;  %922 = vrot.lane.b32.xlu2 %v555_v51, %s3031_s22 }
 0x175   : > { %v1051_v25 = vpop.f32.mrf.mxu2  ;;  %1192 = vadd.xlane.f32.xlu1 %v1191_v43 }
 0x176   : > { %v2838_v39 = vpop.eup %2837  ;;  %v1052_v58 = vadd.f32 %v1051_v25, %v895_v44  ;;  %v3572_v25 = vpop.permute.xlu1 %932 }
 0x177   : > { %v3546_v2 = vadd.f32 %v2838_v39, %v3375_v4 }
 0x178   : > { %2841 = vtanh.f32 %v1052_v58 }
 0x179   : > { %v1197_v37 = vsel %vm440_vm0, %v3546_v2, 0.0  ;;  %v3550_v59 = vpop.f32.mrf.mxu3 }
 0x17a   : > { %v2840_v34 = vpop.eup %2839  ;;  %1198 = vadd.xlane.f32.xlu0 %v1197_v37 }
 0x17b   : > { %v3553_v51 = vadd.f32 %v2840_v34, %v3381_v13 }
 0x17d   : > { %v3555_v56 = vpop.f32.mrf.mxu2  ;;  %v1245_v3 = vsel %vm440_vm0, %v3553_v51, 0.0 }
 0x17e   : > { %v2842_v60 = vpop.eup %2841  ;;  %1246 = vadd.xlane.f32.xlu1 %v1245_v3 }
 0x17f   : > { %v3560_v45 = vadd.f32 %v2842_v60, %v3378_v5 }
 0x181   : > { %v1094_v4 = vpop.f32.mrf.mxu3  ;;  %v1200_v13 = vsel %vm440_vm0, %v3560_v45, 0.0 }
 0x182   : > { %v1095_v52 = vadd.f32 %v1094_v4, %v3481_v20  ;;  %v901_v20 = vpop.permute.xlu0 %900 }
 0x184   : > { %2843 = vtanh.f32 %v1095_v52 }
 0x185   : > { %v1056_v22 = vpop.f32.mrf.mxu2 }
 0x186   : > { %v1057_v24 = vadd.f32 %v1056_v22, %v899_v31  ;;  %1201 = vadd.xlane.f32.xlu1 %v1200_v13 }
 0x188   : > { %2845 = vtanh.f32 %v1057_v24 }
 0x189   : > { %v1096_v7 = vpop.f32.mrf.mxu3 }
 0x18a   : > { %v2844_v54 = vpop.eup %2843  ;;  %v1097_v55 = vadd.f32 %v1096_v7, %v3510_v12  ;;  %v905_v7 = vpop.permute.xlu2 %904 }
 0x18b   : > { %v3568_v5 = vadd.f32 %v2844_v54, %v3405_v28 }
 0x18c   : > { %2847 = vtanh.f32 %v1097_v55 }
 0x18d   : > { %v1059_v35 = vpop.f32.mrf.mxu2  ;;  %v1251_v43 = vsel %vm440_vm0, %v3568_v5, 0.0  ;;  %2849 = vtanh.f32 %v1037_v11 }
 0x18e   : > { %v2846_v44 = vpop.eup %2845  ;;  %v1060_v39 = vadd.f32 %v1059_v35, %v901_v20  ;;  %1252 = vadd.xlane.f32.xlu0 %v1251_v43  ;;  %v1092_v20 = vadd.f32 %v3550_v59, %v3499_v29 }
 0x18f   : > { %v3577_v62 = vadd.f32 %v2846_v44, %v3400_v9  ;;  %v891_v9 = vpop.permute.xlu1 %890 }
 0x190   : > { %2851 = vtanh.f32 %v1060_v39  ;;  %v1047_v13 = vadd.f32 %v3524_v0, %v891_v9  ;;  %v907_v39 = vpop.permute.xlu0 %906 }
 0x191   : > { %v3574_v58 = vpop.f32.mrf.mxu3  ;;  %v1206_v60 = vsel %vm440_vm0, %v3577_v62, 0.0  ;;  %2853 = vtanh.f32 %v3497_v26 }
 0x192   : > { %v2848_v28 = vpop.eup %2847 }
 0x193   : > { %v3580_v12 = vadd.f32 %v2848_v28, %v3410_v33  ;;  %v2850_v37 = vpop.eup %2849 }
 0x194   : > { %v3590_v52 = vadd.f32 %v2850_v37, %v3315_v50 }
 0x195   : > { %v3582_v34 = vpop.f32.mrf.mxu2  ;;  %v1254_v3 = vsel %vm440_vm0, %v3580_v12, 0.0 }
 0x196   : > { %v2852_v4 = vpop.eup %2851  ;;  %1255 = vadd.xlane.f32.xlu1 %v1254_v3  ;;  %1207 = vadd.xlane.f32.xlu0 %v1206_v60  ;;  %v1182_v30 = vsel %vm440_vm0, %v3590_v52, 0.0 }
 0x197   : > { %v3593_v31 = vadd.f32 %v2852_v4, %v3419_v14  ;;  %v2854_v24 = vpop.eup %2853  ;;  %v939_v14 = vpop.permute.xlu1 %938 }
 0x199   : > { %v1101_v33 = vpop.f32.mrf.mxu3  ;;  %v1209_v50 = vsel %vm440_vm0, %v3593_v31, 0.0 }
 0x19a   : > { %v1102_v22 = vadd.f32 %v1101_v33, %v3520_v6  ;;  %v3602_v6 = vadd.f32 %v2854_v24, %v3342_v8 }
 0x19c   : > { %2855 = vtanh.f32 %v1102_v22  ;;  %v1185_v43 = vsel %vm440_vm0, %v3602_v6, 0.0 }
 0x19d   : > { %v1064_v54 = vpop.f32.mrf.mxu2  ;;  %1183 = vadd.xlane.f32.xlu2 %v1182_v30  ;;  %2857 = vtanh.f32 %v1047_v13  ;;  %v1100_v30 = vadd.f32 %v3574_v58, %v3572_v25 }
 0x19e   : > { %v1065_v26 = vadd.f32 %v1064_v54, %v905_v7  ;;  %1210 = vadd.xlane.f32.xlu1 %v1209_v50  ;;  %v3032_v7 = vmov 32.0  }
 0x19f   : > { %v897_v59 = vpop.permute.xlu1 %896 }
 0x1a0   : > { %2859 = vtanh.f32 %v1065_v26  ;;  %v1055_v60 = vadd.f32 %v3555_v56, %v897_v59  ;;  %v913_v59 = vpop.permute.xlu0 %912 }
 0x1a1   : > { %v1104_v0 = vpop.f32.mrf.mxu3 }
 0x1a2   : > { %v2856_v55 = vpop.eup %2855  ;;  %v1105_v11 = vadd.f32 %v1104_v0, %v3532_v17 }
 0x1a3   : > { %v3608_v35 = vadd.f32 %v2856_v55, %v3432_v40  ;;  %v2858_v44 = vpop.eup %2857 }
 0x1a4   : > { %2861 = vtanh.f32 %v1105_v11  ;;  %v3615_v29 = vadd.f32 %v2858_v44, %v3365_v42 }
 0x1a5   : > { %v1066_v28 = vpop.f32.mrf.mxu2  ;;  %1186 = vadd.xlane.f32.xlu2 %v1185_v43  ;;  %v1260_v8 = vsel %vm440_vm0, %v3608_v35, 0.0  ;;  %2863 = vtanh.f32 %v1092_v20  ;;  %v911_v20 = vpop.permute.xlu2 %910 }
 0x1a6   : > { %v2860_v37 = vpop.eup %2859  ;;  %v1067_v3 = vadd.f32 %v1066_v28, %v907_v39  ;;  %1261 = vadd.xlane.f32.xlu0 %v1260_v8  ;;  %v1194_v9 = vsel %vm440_vm0, %v3615_v29, 0.0 }
 0x1a7   : > { %v3618_v40 = vadd.f32 %v2860_v37, %v3441_v10  ;;  %v903_v0 = vpop.permute.xlu1 %902 }
 0x1a8   : > { %2865 = vtanh.f32 %v1067_v3  ;;  %v1062_v25 = vadd.f32 %v3582_v34, %v903_v0 }
 0x1a9   : > { %v1215_v42 = vsel %vm440_vm0, %v3618_v40, 0.0  ;;  %2867 = vtanh.f32 %v1055_v60  ;;  %v1106_v43 = vpop.f32.mrf.mxu3 }
 0x1aa   : > { %v2862_v17 = vpop.eup %2861  ;;  %2869 = vrcp.f32 %v3032_v7 }
 0x1ab   : > { %v3622_v4 = vadd.f32 %v2862_v17, %v3449_v61  ;;  %v2864_v33 = vpop.eup %2863  ;;  %2871 = vtanh.f32 %v1100_v30 }
 0x1ac   : > { %v3631_v56 = vadd.f32 %v2864_v33, %v3386_v15  ;;  %2873 = vtanh.f32 %v1062_v25 }
 0x1ad   : > { %1195 = vadd.xlane.f32.xlu2 %v1194_v9  ;;  %v1263_v22 = vsel %vm440_vm0, %v3622_v4, 0.0  ;;  %v1069_v13 = vpop.f32.mrf.mxu2  ;;  %v3653_v17 = vpop.permute.xlu2 %916 }
 0x1ae   : > { %v2866_v10 = vpop.eup %2865  ;;  %1264 = vadd.xlane.f32.xlu1 %v1263_v22  ;;  %1216 = vadd.xlane.f32.xlu0 %v1215_v42  ;;  %v1248_v24 = vsel %vm440_vm0, %v3631_v56, 0.0  ;;  %v3662_v7 = vpop.permute.xlu0 %918 }
 0x1af   : > { %v3634_v61 = vadd.f32 %v2866_v10, %v3444_v19  ;;  %v2868_v54 = vpop.eup %2867  ;;  %v909_v3 = vpop.permute.xlu1 %908 }
 0x1b0   : > { %v3643_v15 = vadd.f32 %v2868_v54, %v3397_v53  ;;  %v2870_v26 = vpop.eup %2869  ;;  %v1107_v53 = vadd.f32 %v1106_v43, %v939_v14 }
 0x1b1   : > { %v1218_v50 = vsel %vm440_vm0, %v3634_v61, 0.0  ;;  %v2872_v55 = vpop.eup %2871  ;;  %v1270_v11 = vmul.f32 32.0, %v2870_v26  ;;  %vm1274_vm1 = vweird.f32 %v2870_v26 }
 0x1b2   : > { %v1203_v58 = vsel %vm440_vm0, %v3643_v15, 0.0  ;;  %v3649_v44 = vadd.f32 %v2872_v55, %v3427_v57  ;;  %v2874_v37 = vpop.eup %2873  ;;  %2875 = vtanh.f32 %v1107_v53  ;;  %v1070_v57 = vadd.f32 %v1069_v13, %v909_v3 }
 0x1b3   : > { %v1271_v39 = vsub.f32 1.0, %v1270_v11  ;;  %v3656_v60 = vadd.f32 %v2874_v37, %v3422_v23 }
 0x1b4   : > { %v1257_v8 = vsel %vm440_vm0, %v3649_v44, 0.0  ;;  %2877 = vtanh.f32 %v1070_v57 }
 0x1b5   : > { %1249 = vadd.xlane.f32.xlu2 %v1248_v24  ;;  %v1071_v19 = vpop.f32.mrf.mxu2  ;;  %v1272_v34 = vmul.f32 %v2870_v26, %v1271_v39  ;;  %v1212_v14 = vsel %vm440_vm0, %v3656_v60, 0.0 }
 0x1b6   : > { %1219 = vadd.xlane.f32.xlu1 %v1218_v50  ;;  %v1072_v22 = vadd.f32 %v1071_v19, %v911_v20 }
 0x1b7   : > { %v1273_v9 = vadd.f32 %v2870_v26, %v1272_v34  ;;  %v915_v30 = vpop.permute.xlu1 %914 }
 0x1b8   : > { %v2876_v33 = vpop.eup %2875  ;;  %2879 = vtanh.f32 %v1072_v22 }
 0x1b9   : > { %v3660_v10 = vsel %vm1274_vm1, %v2870_v26, %v1273_v9  ;;  %v3666_v54 = vadd.f32 %v2876_v33, %v3453_v63 }
 0x1ba   : > { %v2878_v26 = vpop.eup %2877 }
 0x1bb   : > { %v1266_v50 = vsel %vm440_vm0, %v3666_v54, 0.0  ;;  %v3677_v20 = vadd.f32 %v2878_v26, %v3461_v46 }
 0x1bd   : > { %1204 = vadd.xlane.f32.xlu2 %v1203_v58  ;;  %v1074_v28 = vpop.f32.mrf.mxu2  ;;  %v1221_v53 = vsel %vm440_vm0, %v3677_v20, 0.0 }
 0x1be   : > { %v1075_v0 = vadd.f32 %v1074_v28, %v913_v59  ;;  %v2880_v55 = vpop.eup %2879 }
 0x1bf   : > { %v921_v58 = vpop.permute.xlu1 %920  ;;  %v3681_v43 = vadd.f32 %v2880_v55, %v3464_v21 }
 0x1c0   : > { %2881 = vtanh.f32 %v1075_v0 }
 0x1c1   : > { %v1224_v46 = vsel %vm440_vm0, %v3681_v43, 0.0 }
 0x1c5   : > { %1258 = vadd.xlane.f32.xlu2 %v1257_v8  ;;  %v1076_v42 = vpop.f32.mrf.mxu2 }
 0x1c6   : > { %v1077_v8 = vadd.f32 %v1076_v42, %v915_v30  ;;  %v2882_v34 = vpop.eup %2881 }
 0x1c7   : > { %v3698_v9 = vadd.f32 %v2882_v34, %v3472_v41 }
 0x1c8   : > { %2883 = vtanh.f32 %v1077_v8 }
 0x1cd   : > { %1213 = vadd.xlane.f32.xlu2 %v1212_v14  ;;  %v1079_v11 = vpop.f32.mrf.mxu2  ;;  %v1227_v14 = vsel %vm440_vm0, %v3698_v9, 0.0 }
 0x1ce   : > { %v2884_v22 = vpop.eup %2883  ;;  %v1080_v34 = vadd.f32 %v1079_v11, %v3653_v17 }
 0x1cf   : > { %v1175_v24 = vpop.xlane.xlu2 %1174 }
 0x1d0   : > { %v1276_v23 = vmul.f32 %v3660_v10, %v1175_v24 }
 0x1d2   : > { %v3669_v13 = vsub.f32 %v3508_v38, %v1276_v23 }
 0x1d4   : > { %v1340_v19 = vmul.f32 %v3669_v13, %v3669_v13 }
 0x1d5   : > { %1267 = vadd.xlane.f32.xlu2 %v1266_v50  ;;  %v1081_v3 = vpop.f32.mrf.mxu2 }
 0x1d6   : > { %v1372_v25 = vsel %vm440_vm0, %v1340_v19, 0.0 }
 0x1d7   : > { %1373 = vadd.xlane.f32.xlu0 %v1372_v25 }
 0x1d8   : > { %v1178_v63 = vpop.xlane.xlu0 %1177 }
 0x1d9   : > { %v1277_v38 = vmul.f32 %v3660_v10, %v1178_v63 }
 0x1db   : > { %v3684_v39 = vsub.f32 %v3518_v16, %v1277_v38 }
 0x1dd   : > { %1222 = vadd.xlane.f32.xlu2 %v1221_v53  ;;  %v1341_v28 = vmul.f32 %v3684_v39, %v3684_v39  ;;  %v1084_v30 = vpop.f32.mrf.mxu2 }
 0x1de   : > { %v1085_v41 = vadd.f32 %v1084_v30, %v921_v58 }
 0x1df   : > { %1225 = vadd.xlane.f32.xlu0 %v1224_v46  ;;  %v1375_v37 = vsel %vm440_vm0, %v1341_v28, 0.0 }
 0x1e0   : > { %v1181_v21 = vpop.xlane.xlu1 %1180  ;;  %1376 = vadd.xlane.f32.xlu1 %v1375_v37  ;;  %v1190_v42 = vpop.xlane.xlu0 %1189  ;;  %2885 = vtanh.f32 %v1085_v41 }
 0x1e1   : > { %v1278_v16 = vmul.f32 %v3660_v10, %v1181_v21  ;;  %v1281_v24 = vmul.f32 %v3660_v10, %v1190_v42  ;;  %2887 = vtanh.f32 %v1080_v34 }
 0x1e3   : > { %v3695_v59 = vsub.f32 %v3527_v32, %v1278_v16  ;;  %v3707_v32 = vadd.f32 %v2884_v22, %v3475_v36  ;;  %v3710_v23 = vsub.f32 %v3530_v1, %v1281_v24 }
 0x1e5   : > { %v1342_v57 = vmul.f32 %v3695_v59, %v3695_v59  ;;  %v1230_v50 = vsel %vm440_vm0, %v3707_v32, 0.0  ;;  %v1345_v19 = vmul.f32 %v3710_v23, %v3710_v23 }
 0x1e6   : > { %v2886_v0 = vpop.eup %2885 }
 0x1e7   : > { %v1378_v33 = vsel %vm440_vm0, %v1342_v57, 0.0  ;;  %v1387_v26 = vsel %vm440_vm0, %v1345_v19, 0.0  ;;  %v3719_v58 = vadd.f32 %v2886_v0, %v3502_v27  ;;  %v923_v27 = vpop.permute.xlu2 %922  ;;  %v2888_v30 = vpop.eup %2887 }
 0x1e8   : > { %1228 = vadd.xlane.f32.xlu1 %v1227_v14  ;;  %1379 = vadd.xlane.f32.xlu2 %v1378_v33  ;;  %v1193_v57 = vpop.xlane.xlu1 %1192 }
 0x1e9   : > { %v1239_v55 = vsel %vm440_vm0, %v3719_v58, 0.0 }
 0x1ed   : > { %v1199_v25 = vpop.xlane.xlu0 %1198 }
 0x1ee   : > { %v1284_v36 = vmul.f32 %v3660_v10, %v1199_v25 }
 0x1f0   : > { %1231 = vadd.xlane.f32.xlu2 %v1230_v50  ;;  %v3722_v1 = vsub.f32 %v3546_v2, %v1284_v36  ;;  %v1086_v50 = vpop.f32.mrf.mxu2 }
 0x1f1   : > { %v1247_v19 = vpop.xlane.xlu1 %1246 }
 0x1f2   : > { %v1348_v53 = vmul.f32 %v3722_v1, %v3722_v1 }
 0x1f4   : > { %v1396_v8 = vsel %vm440_vm0, %v1348_v53, 0.0 }
 0x1f8   : > { %1388 = vadd.xlane.f32.xlu2 %v1387_v26  ;;  %v1282_v26 = vmul.f32 %v3660_v10, %v1193_v57 }
 0x1fa   : > { %v3765_v36 = vsub.f32 %v3539_v49, %v1282_v26 }
 0x200   : > { %1240 = vadd.xlane.f32.xlu2 %v1239_v55 }
 0x201   : > { %v1253_v63 = vpop.xlane.xlu0 %1252 }
 0x202   : > { %v1302_v38 = vmul.f32 %v3660_v10, %v1253_v63 }
 0x204   : > { %v3730_v28 = vsub.f32 %v3568_v5, %v1302_v38 }
 0x206   : > { %v1366_v37 = vmul.f32 %v3730_v28, %v3730_v28 }
 0x208   : > { %1397 = vadd.xlane.f32.xlu2 %v1396_v8  ;;  %v1450_v16 = vsel %vm440_vm0, %v1366_v37, 0.0 }
 0x209   : > { %v1208_v46 = vpop.xlane.xlu0 %1207 }
 0x20a   : > { %v1287_v2 = vmul.f32 %v3660_v10, %v1208_v46  ;;  %v1202_v46 = vpop.xlane.xlu1 %1201 }
 0x20c   : > { %v3738_v21 = vsub.f32 %v3577_v62, %v1287_v2  ;;  %v1082_v62 = vadd.f32 %v1081_v3, %v3662_v7  ;;  %v3760_v7 = vadd.f32 %v2888_v30, %v3489_v47  ;;  %v1087_v3 = vadd.f32 %v1086_v50, %v923_v27 }
 0x20d   : > { %v1346_v27 = vmul.f32 %v3765_v36, %v3765_v36  ;;  %v1285_v50 = vmul.f32 %v3660_v10, %v1202_v46 }
 0x20e   : > { %v1351_v22 = vmul.f32 %v3738_v21, %v3738_v21  ;;  %2889 = vtanh.f32 %v1082_v62  ;;  %v1233_v55 = vsel %vm440_vm0, %v3760_v7, 0.0 }
 0x20f   : > { %2891 = vtanh.f32 %v1087_v3  ;;  %v1390_v57 = vsel %vm440_vm0, %v1346_v27, 0.0 }
 0x210   : > { %1451 = vadd.xlane.f32.xlu2 %v1450_v16  ;;  %v1184_v5 = vpop.xlane.xlu2 %1183  ;;  %v1405_v11 = vsel %vm440_vm0, %v1351_v22, 0.0  ;;  %v1300_v22 = vmul.f32 %v3660_v10, %v1247_v19 }
 0x211   : > { %v1279_v14 = vmul.f32 %v3660_v10, %v1184_v5 }
 0x212   : > { %v1256_v62 = vpop.xlane.xlu1 %1255 }
 0x213   : > { %v3743_v33 = vsub.f32 %v3590_v52, %v1279_v14 }
 0x214   : > { %v2890_v38 = vpop.eup %2889 }
 0x215   : > { %v1343_v17 = vmul.f32 %v3743_v33, %v3743_v33  ;;  %v3775_v49 = vadd.f32 %v2890_v38, %v3492_v48  ;;  %v2892_v34 = vpop.eup %2891 }
 0x217   : > { %v1381_v42 = vsel %vm440_vm0, %v1343_v17, 0.0  ;;  %v1236_v5 = vsel %vm440_vm0, %v3775_v49, 0.0 }
 0x218   : > { %1406 = vadd.xlane.f32.xlu2 %v1405_v11  ;;  %1382 = vadd.xlane.f32.xlu0 %v1381_v42  ;;  %v1187_v24 = vpop.xlane.xlu2 %1186  ;;  %v3799_v42 = vsub.f32 %v3553_v51, %v1300_v22 }
 0x219   : > { %v1280_v41 = vmul.f32 %v3660_v10, %v1187_v24  ;;  %v3753_v52 = vpop.xlane.xlu0 %1261  ;;  %v3033_v24 = vmov 31.0  }
 0x21a   : > { %2893 = vrcp.f32 %v3033_v24  ;;  %v1364_v26 = vmul.f32 %v3799_v42, %v3799_v42 }
 0x21b   : > { %v3757_v0 = vsub.f32 %v3602_v6, %v1280_v41 }
 0x21d   : > { %v1344_v25 = vmul.f32 %v3757_v0, %v3757_v0 }
 0x21f   : > { %v1384_v63 = vsel %vm440_vm0, %v1344_v25, 0.0  ;;  %v3812_v25 = vsub.f32 %v3560_v45, %v1285_v50 }
 0x220   : > { %1234 = vadd.xlane.f32.xlu0 %v1233_v55  ;;  %1385 = vadd.xlane.f32.xlu1 %v1384_v63  ;;  %v1196_v6 = vpop.xlane.xlu2 %1195  ;;  %v2894_v3 = vpop.eup %2893  ;;  %v1444_v63 = vsel %vm440_vm0, %v1364_v26, 0.0 }
 0x221   : > { %v1217_v53 = vpop.xlane.xlu0 %1216  ;;  %v1283_v8 = vmul.f32 %v3660_v10, %v1196_v6  ;;  %v1349_v27 = vmul.f32 %v3812_v25, %v3812_v25  ;;  %vm1473_vm2 = vweird.f32 %v2894_v3 }
 0x222   : > { %v1290_v47 = vmul.f32 %v3660_v10, %v1217_v53  ;;  %v1469_v53 = vmul.f32 31.0, %v2894_v3 }
 0x223   : > { %v3783_v16 = vsub.f32 %v3615_v29, %v1283_v8 }
 0x224   : > { %v3778_v2 = vsub.f32 %v3618_v40, %v1290_v47  ;;  %v3790_v40 = vadd.f32 %v2892_v34, %v3505_v18  ;;  %v1303_v47 = vmul.f32 %v3660_v10, %v1256_v62 }
 0x225   : > { %v1347_v29 = vmul.f32 %v3783_v16, %v3783_v16 }
 0x226   : > { %v1354_v37 = vmul.f32 %v3778_v2, %v3778_v2  ;;  %v1242_v11 = vsel %vm440_vm0, %v3790_v40, 0.0 }
 0x227   : > { %v1393_v18 = vsel %vm440_vm0, %v1347_v29, 0.0 }
 0x228   : > { %1391 = vadd.xlane.f32.xlu0 %v1390_v57  ;;  %1237 = vadd.xlane.f32.xlu1 %v1236_v5  ;;  %v1250_v48 = vpop.xlane.xlu2 %1249  ;;  %v1414_v14 = vsel %vm440_vm0, %v1354_v37, 0.0  ;;  %v3828_v37 = vsub.f32 %v3580_v12, %v1303_v47  ;;  %v1399_v57 = vsel %vm440_vm0, %v1349_v27, 0.0 }
 0x229   : > { %1415 = vadd.xlane.f32.xlu2 %v1414_v14  ;;  %v1301_v17 = vmul.f32 %v3660_v10, %v1250_v48 }
 0x22a   : > { %v1367_v29 = vmul.f32 %v3828_v37, %v3828_v37 }
 0x22b   : > { %v3802_v30 = vsub.f32 %v3631_v56, %v1301_v17  ;;  %v1211_v56 = vpop.xlane.xlu1 %1210 }
 0x22c   : > { %v1288_v22 = vmul.f32 %v3660_v10, %v1211_v56 }
 0x22d   : > { %v1365_v51 = vmul.f32 %v3802_v30, %v3802_v30 }
 0x22e   : > { %v3842_v62 = vsub.f32 %v3593_v31, %v1288_v22 }
 0x22f   : > { %v1447_v38 = vsel %vm440_vm0, %v1365_v51, 0.0 }
 0x230   : > { %1243 = vadd.xlane.f32.xlu0 %v1242_v11  ;;  %1394 = vadd.xlane.f32.xlu1 %v1393_v18  ;;  %v1205_v41 = vpop.xlane.xlu2 %1204  ;;  %v1453_v18 = vsel %vm440_vm0, %v1367_v29, 0.0 }
 0x231   : > { %v1286_v19 = vmul.f32 %v3660_v10, %v1205_v41 }
 0x233   : > { %v3815_v55 = vsub.f32 %v3643_v15, %v1286_v19  ;;  %v1470_v15 = vsub.f32 1.0, %v1469_v53  ;;  %v3825_v46 = vpop.xlane.xlu1 %1264 }
 0x235   : > { %v1350_v45 = vmul.f32 %v3815_v55, %v3815_v55  ;;  %v1471_v14 = vmul.f32 %v2894_v3, %v1470_v15 }
 0x237   : > { %v1402_v5 = vsel %vm440_vm0, %v1350_v45, 0.0 }
 0x238   : > { %1445 = vadd.xlane.f32.xlu0 %v1444_v63  ;;  %1448 = vadd.xlane.f32.xlu1 %v1447_v38  ;;  %v1259_v6 = vpop.xlane.xlu2 %1258 }
 0x239   : > { %v1304_v8 = vmul.f32 %v3660_v10, %v1259_v6 }
 0x23b   : > { %v3831_v34 = vsub.f32 %v3649_v44, %v1304_v8  ;;  %v1472_v44 = vadd.f32 %v2894_v3, %v1471_v14  ;;  %v1220_v41 = vpop.xlane.xlu1 %1219 }
 0x23c   : > { %v1291_v51 = vmul.f32 %v3660_v10, %v1220_v41 }
 0x23d   : > { %v1368_v12 = vmul.f32 %v3831_v34, %v3831_v34  ;;  %v3851_v19 = vsel %vm1473_vm2, %v2894_v3, %v1472_v44 }
 0x23e   : > { %v3860_v63 = vsub.f32 %v3634_v61, %v1291_v51 }
 0x23f   : > { %v1456_v24 = vsel %vm440_vm0, %v1368_v12, 0.0 }
 0x240   : > { %1400 = vadd.xlane.f32.xlu0 %v1399_v57  ;;  %1403 = vadd.xlane.f32.xlu1 %v1402_v5  ;;  %v1214_v48 = vpop.xlane.xlu2 %1213  ;;  %v1355_v61 = vmul.f32 %v3860_v63, %v3860_v63 }
 0x241   : > { %v1289_v17 = vmul.f32 %v3660_v10, %v1214_v48 }
 0x243   : > { %v3845_v11 = vsub.f32 %v3656_v60, %v1289_v17  ;;  %v1352_v60 = vmul.f32 %v3842_v62, %v3842_v62 }
 0x245   : > { %v1353_v56 = vmul.f32 %v3845_v11, %v3845_v11  ;;  %v1408_v38 = vsel %vm440_vm0, %v1352_v60, 0.0 }
 0x247   : > { %v1411_v3 = vsel %vm440_vm0, %v1353_v56, 0.0 }
 0x248   : > { %1454 = vadd.xlane.f32.xlu0 %v1453_v18  ;;  %1457 = vadd.xlane.f32.xlu1 %v1456_v24  ;;  %v3849_v50 = vpop.xlane.xlu2 %1267 }
 0x24a   : > { %v1374_v26 = vpop.xlane.xlu0 %1373 }
 0x24b   : > { %v1475_v31 = vmul.f32 %v3851_v19, %v1374_v26 }
 0x24d   : > { %2895 = vrsqrt.f32 %v1475_v31  ;;  %vm1514_vm3 = vcmp.eq.f32.partialorder %v1475_v31, inf  ;;  %vm1516_vm4 = vcmp.eq.f32.partialorder %v1475_v31, 0.0 }
 0x250   : > { %1409 = vadd.xlane.f32.xlu0 %v1408_v38  ;;  %1412 = vadd.xlane.f32.xlu1 %v1411_v3  ;;  %v1223_v6 = vpop.xlane.xlu2 %1222 }
 0x251   : > { %v1292_v53 = vmul.f32 %v3660_v10, %v1223_v6  ;;  %v1517_v6 = vand.u32 2147483648, %v1475_v31 }
 0x252   : > { %v1226_v47 = vpop.xlane.xlu0 %1225 }
 0x253   : > { %v2896_v8 = vpop.eup %2895  ;;  %v3866_v27 = vsub.f32 %v3677_v20, %v1292_v53  ;;  %v1293_v45 = vmul.f32 %v3660_v10, %v1226_v47  ;;  %v1377_v15 = vpop.xlane.xlu1 %1376  ;;  %v1417_v20 = vsel %vm440_vm0, %v1355_v61, 0.0 }
 0x254   : > { %v1508_v57 = vmul.f32 %v2896_v8, %v1475_v31  ;;  %v1476_v5 = vmul.f32 %v3851_v19, %v1377_v15 }
 0x255   : > { %v3873_v48 = vsub.f32 %v3681_v43, %v1293_v45  ;;  %v1356_v14 = vmul.f32 %v3866_v27, %v3866_v27 }
 0x256   : > { %v1509_v22 = vmul.f32 %v2896_v8, %v1508_v57  ;;  %2897 = vrsqrt.f32 %v1476_v5  ;;  %vm1526_vm5 = vcmp.eq.f32.partialorder %v1476_v5, inf  ;;  %vm1528_vm6 = vcmp.eq.f32.partialorder %v1476_v5, 0.0 }
 0x257   : > { %v1420_v17 = vsel %vm440_vm0, %v1356_v14, 0.0  ;;  %v1357_v29 = vmul.f32 %v3873_v48, %v3873_v48 }
 0x258   : > { %v1510_v12 = vmul.f32 0.5, %v1509_v22  ;;  %1418 = vadd.xlane.f32.xlu0 %v1417_v20  ;;  %1421 = vadd.xlane.f32.xlu1 %v1420_v17 }
 0x259   : > { %v1423_v44 = vsel %vm440_vm0, %v1357_v29, 0.0 }
 0x25a   : > { %v1511_v18 = vsub.f32 1.5, %v1510_v12  ;;  %1424 = vadd.xlane.f32.xlu2 %v1423_v44 }
 0x25b   : > { %v1229_v43 = vpop.xlane.xlu1 %1228  ;;  %v1380_v24 = vpop.xlane.xlu2 %1379 }
 0x25c   : > { %v2898_v41 = vpop.eup %2897  ;;  %v1512_v26 = vmul.f32 %v2896_v8, %v1511_v18  ;;  %v1294_v51 = vmul.f32 %v3660_v10, %v1229_v43  ;;  %v3884_v60 = vmul.f32 %v3851_v19, %v1380_v24  ;;  %v1529_v18 = vand.u32 2147483648, %v1476_v5 }
 0x25d   : > { %v1520_v56 = vmul.f32 %v2898_v41, %v1476_v5 }
 0x25e   : > { %v1513_v38 = vmul.f32 %v1512_v26, %v1475_v31  ;;  %v3887_v3 = vsub.f32 %v3698_v9, %v1294_v51  ;;  %2899 = vrsqrt.f32 %v3884_v60  ;;  %vm1538_vm9 = vcmp.eq.f32.partialorder %v3884_v60, inf }
 0x25f   : > { %v1521_v53 = vmul.f32 %v2898_v41, %v1520_v56  ;;  %vm1540_vm11 = vcmp.eq.f32.partialorder %v3884_v60, 0.0 }
 0x260   : > { %v1515_v47 = vsel %vm1514_vm3, %v1475_v31, %v1513_v38  ;;  %v1358_v8 = vmul.f32 %v3887_v3, %v3887_v3 }
 0x261   : > { %v1518_v45 = vsel %vm1516_vm4, %v1517_v6, %v1515_v47  ;;  %v1522_v15 = vmul.f32 0.5, %v1521_v53 }
 0x262   : > { %v1926_v61 = vadd.f32 1e-06, %v1518_v45  ;;  %v1426_v57 = vsel %vm440_vm0, %v1358_v8, 0.0 }
 0x263   : > { %v1523_v14 = vsub.f32 1.5, %v1522_v15  ;;  %1427 = vadd.xlane.f32.xlu0 %v1426_v57  ;;  %v1232_v22 = vpop.xlane.xlu2 %1231 }
 0x264   : > { %v2900_v9 = vpop.eup %2899  ;;  %2901 = vrcp.f32 %v1926_v61  ;;  %v1295_v29 = vmul.f32 %v3660_v10, %v1232_v22  ;;  %v1967_v57 = vand.u32 2147483647, %v1926_v61  ;;  %vm1963_vm8 = vweird.f32 %v1926_v61 }
 0x265   : > { %v1524_v20 = vmul.f32 %v2898_v41, %v1523_v14  ;;  %v1532_v17 = vmul.f32 %v2900_v9, %v3884_v60  ;;  %v3908_v14 = vstv %s1891_s23 }
 0x266   : > { %v3896_v44 = vsub.f32 %v3707_v32, %v1295_v29  ;;  %vm1968_vm12 = vcmp.eq.f32.partialorder %v1967_v57, 8.507059e+37 }
 0x267   : > { %v1525_v12 = vmul.f32 %v1524_v20, %v1476_v5  ;;  %v1533_v31 = vmul.f32 %v2900_v9, %v1532_v17  ;;  %v1541_v17 = vand.u32 2147483648, %v3884_v60 }
 0x268   : > { %v1359_v26 = vmul.f32 %v3896_v44, %v3896_v44 }
 0x269   : > { %v1527_v43 = vsel %vm1526_vm5, %v1476_v5, %v1525_v12  ;;  %v1534_v24 = vmul.f32 0.5, %v1533_v31  ;;  %v1969_v5 = vand.u32 2147483648, %v1926_v61  ;;  %v1894_v31 = vmul.f32 %v3908_v14, %v3669_v13 }
 0x26a   : > { %v2902_v51 = vpop.eup %2901  ;;  %v1530_v41 = vsel %vm1528_vm6, %v1529_v18, %v1527_v43  ;;  %v1429_v32 = vsel %vm440_vm0, %v1359_v26, 0.0  ;;  %v3917_v26 = vstv %s1892_s24  ;;  %v1307_v13 = vmul.f32 %v3660_v10, %v3849_v50 }
 0x26b   : > { %v1959_v56 = vmul.f32 %v2902_v51, %v1926_v61  ;;  %v3900_v38 = vadd.f32 1e-06, %v1530_v41  ;;  %v1535_v6 = vsub.f32 1.5, %v1534_v24  ;;  %v1389_v53 = vpop.xlane.xlu2 %1388  ;;  %1430 = vadd.xlane.f32.xlu1 %v1429_v32  ;;  %vm1964_vm7 = vweird.f32 %v2902_v51 }
 0x26c   : > { %v3904_v47 = vmul.f32 %v3851_v19, %v1389_v53  ;;  %vm1965_vm10 = vmor %vm1963_vm8, %vm1964_vm7  ;;  %v1970_v29 = vor.u32 1.1754944e-38, %v1969_v5 }
 0x26d   : > { %v1960_v8 = vsub.f32 1.0, %v1959_v56  ;;  %2903 = vrcp.f32 %v3900_v38  ;;  %v1536_v45 = vmul.f32 %v2900_v9, %v1535_v6  ;;  %v1984_v5 = vand.u32 2147483648, %v3900_v38 }
 0x26e   : > { %2905 = vrsqrt.f32 %v3904_v47  ;;  %vm1978_vm14 = vweird.f32 %v3900_v38  ;;  %vm1574_vm2 = vcmp.eq.f32.partialorder %v3904_v47, inf  ;;  %vm1576_vm3 = vcmp.eq.f32.partialorder %v3904_v47, 0.0 }
 0x26f   : > { %v1961_v15 = vmul.f32 %v2902_v51, %v1960_v8  ;;  %v1537_v22 = vmul.f32 %v1536_v45, %v3884_v60 }
 0x271   : > { %v1962_v20 = vadd.f32 %v2902_v51, %v1961_v15  ;;  %v1539_v12 = vsel %vm1538_vm9, %v3884_v60, %v1537_v22  ;;  %v1982_v22 = vand.u32 2147483647, %v3900_v38 }
 0x272   : > { %v1542_v43 = vsel %vm1540_vm11, %v1541_v17, %v1539_v12  ;;  %v1985_v12 = vor.u32 1.1754944e-38, %v1984_v5 }
 0x273   : > { %v2904_v9 = vpop.eup %2903  ;;  %v1966_v18 = vsel %vm1965_vm10, %v2902_v51, %v1962_v20  ;;  %v1241_v24 = vpop.xlane.xlu2 %1240  ;;  %v3920_v6 = vadd.f32 1e-06, %v1542_v43  ;;  %vm1983_vm1 = vcmp.eq.f32.partialorder %v1982_v22, 8.507059e+37 }
 0x274   : > { %v2906_v61 = vpop.eup %2905  ;;  %v1971_v41 = vsel %vm1968_vm12, %v1970_v29, %v1966_v18  ;;  %v1974_v56 = vmul.f32 %v2904_v9, %v3900_v38  ;;  %v1298_v60 = vmul.f32 %v3660_v10, %v1241_v24  ;;  %vm1979_vm13 = vweird.f32 %v2904_v9 }
 0x275   : > { %v1972_v53 = vmul.f32 %v1971_v41, %v1894_v31  ;;  %v1568_v32 = vmul.f32 %v2906_v61, %v3904_v47  ;;  %2907 = vrcp.f32 %v3920_v6  ;;  %v3946_v29 = vsub.f32 %v3666_v54, %v1307_v13  ;;  %vm1980_vm15 = vmor %vm1978_vm14, %vm1979_vm13 }
 0x276   : > { %v1975_v51 = vsub.f32 1.0, %v1974_v56  ;;  %v3937_v15 = vsub.f32 %v3719_v58, %v1298_v60  ;;  %v1895_v24 = vmul.f32 %v3908_v14, %v3684_v39  ;;  %v1997_v5 = vand.u32 2147483647, %v3920_v6 }
 0x277   : > { %v2439_v8 = vadd.f32 %v3917_v26, %v1972_v53  ;;  %v1569_v45 = vmul.f32 %v2906_v61, %v1568_v32  ;;  %v1371_v39 = vmul.f32 %v3946_v29, %v3946_v29  ;;  %vm1993_vm5 = vweird.f32 %v3920_v6 }
 0x278   : > { %v1976_v57 = vmul.f32 %v2904_v9, %v1975_v51  ;;  %v1362_v50 = vmul.f32 %v3937_v15, %v3937_v15  ;;  %v1999_v51 = vand.u32 2147483648, %v3920_v6  ;;  %vm1998_vm7 = vcmp.eq.f32.partialorder %v1997_v5, 8.507059e+37 }
 0x279   : > { %2471 = vst.msk [vmem:[%s3929_s27] sm:$0xff] %vm440_vm0, %v2439_v8  ;;  %v1570_v20 = vmul.f32 0.5, %v1569_v45  ;;  %v1577_v8 = vand.u32 2147483648, %v3904_v47 }
 0x27a   : > { %v1977_v17 = vadd.f32 %v2904_v9, %v1976_v57  ;;  %v1438_v31 = vsel %vm440_vm0, %v1362_v50, 0.0  ;;  %v1465_v50 = vsel %vm440_vm0, %v1371_v39, 0.0 }
 0x27b   : > { %v1571_v58 = vsub.f32 1.5, %v1570_v20  ;;  %v1398_v18 = vpop.xlane.xlu2 %1397  ;;  %v2908_v43 = vpop.eup %2907  ;;  %1439 = vadd.xlane.f32.xlu1 %v1438_v31 }
 0x27c   : > { %v1981_v41 = vsel %vm1980_vm15, %v2904_v9, %v1977_v17  ;;  %v3952_v56 = vmul.f32 %v3851_v19, %v1398_v18  ;;  %v1989_v54 = vmul.f32 %v2908_v43, %v3920_v6  ;;  %vm1994_vm4 = vweird.f32 %v2908_v43 }
 0x27d   : > { %v1986_v38 = vsel %vm1983_vm1, %v1985_v12, %v1981_v41  ;;  %v1572_v53 = vmul.f32 %v2906_v61, %v1571_v58  ;;  %vm1995_vm6 = vmor %vm1993_vm5, %vm1994_vm4  ;;  %v2000_v58 = vor.u32 1.1754944e-38, %v1999_v51 }
 0x27e   : > { %v1987_v32 = vmul.f32 %v1986_v38, %v1895_v24  ;;  %2909 = vrsqrt.f32 %v3952_v56  ;;  %v1990_v60 = vsub.f32 1.0, %v1989_v54  ;;  %vm1610_vm9 = vcmp.eq.f32.partialorder %v3952_v56, inf }
 0x27f   : > { %v1573_v13 = vmul.f32 %v1572_v53, %v3904_v47  ;;  %vm1612_vm11 = vcmp.eq.f32.partialorder %v3952_v56, 0.0 }
 0x280   : > { %v2440_v9 = vadd.f32 %v3917_v26, %v1987_v32  ;;  %v1991_v61 = vmul.f32 %v2908_v43, %v1990_v60  ;;  %v1899_v60 = vmul.f32 %v3908_v14, %v3710_v23  ;;  %v3996_v23 = vmul.f32 %v3908_v14, %v3812_v25 }
 0x281   : > { %v1575_v45 = vsel %vm1574_vm2, %v3904_v47, %v1573_v13  ;;  %v1896_v47 = vmul.f32 %v3908_v14, %v3695_v59  ;;  %v3982_v59 = vmul.f32 %v3908_v14, %v3765_v36  ;;  %v3990_v13 = vmul.f32 %v3908_v14, %v3799_v42 }
 0x282   : > { %2472 = vst.msk [vmem:[%s3929_s27 + $0x8] sm:$0xff] %vm440_vm0, %v2440_v9  ;;  %v1578_v57 = vsel %vm1576_vm3, %v1577_v8, %v1575_v45  ;;  %v1992_v22 = vadd.f32 %v2908_v43, %v1991_v61  ;;  %v1306_v42 = vmul.f32 %v3660_v10, %v3825_v46  ;;  %v4013_v25 = vmul.f32 %v3908_v14, %v3828_v37 }
 0x283   : > { %v1931_v20 = vadd.f32 1e-06, %v1578_v57  ;;  %v1452_v17 = vpop.xlane.xlu2 %1451  ;;  %1466 = vadd.xlane.f32.xlu1 %v1465_v50  ;;  %v1305_v46 = vmul.f32 %v3660_v10, %v3753_v52  ;;  %v1613_v37 = vand.u32 2147483648, %v3952_v56 }
 0x284   : > { %v2910_v12 = vpop.eup %2909  ;;  %v3971_v31 = vmul.f32 %v3851_v19, %v1452_v17  ;;  %v1996_v18 = vsel %vm1995_vm6, %v2908_v43, %v1992_v22  ;;  %v3986_v43 = vmul.f32 %v3908_v14, %v3722_v1  ;;  %v4003_v1 = vmul.f32 %v3908_v14, %v3730_v28 }
 0x285   : > { %2911 = vrcp.f32 %v1931_v20  ;;  %v2001_v24 = vsel %vm1998_vm7, %v2000_v58, %v1996_v18  ;;  %v1604_v6 = vmul.f32 %v2910_v12, %v3952_v56  ;;  %v2042_v50 = vand.u32 2147483647, %v1931_v20 }
 0x286   : > { %2913 = vrsqrt.f32 %v3971_v31  ;;  %v2002_v41 = vmul.f32 %v2001_v24, %v1896_v47  ;;  %v2044_v17 = vand.u32 2147483648, %v1931_v20  ;;  %v4021_v18 = vsub.f32 %v3622_v4, %v1306_v42 }
 0x287   : > { %v1605_v38 = vmul.f32 %v2910_v12, %v1604_v6  ;;  %vm2038_vm10 = vweird.f32 %v1931_v20  ;;  %vm2043_vm13 = vcmp.eq.f32.partialorder %v2042_v50, 8.507059e+37  ;;  %vm1826_vm14 = vcmp.eq.f32.partialorder %v3971_v31, inf }
 0x288   : > { %v2441_v54 = vadd.f32 %v3917_v26, %v2002_v41  ;;  %v2045_v52 = vor.u32 1.1754944e-38, %v2044_v17  ;;  %v1370_v50 = vmul.f32 %v4021_v18, %v4021_v18  ;;  %vm1828_vm15 = vcmp.eq.f32.partialorder %v3971_v31, 0.0 }
 0x289   : > { %v1606_v53 = vmul.f32 0.5, %v1605_v38 }
 0x28a   : > { %2473 = vst.msk [vmem:[%s3929_s27 + $0x10] sm:$0xff] %vm440_vm0, %v2441_v54 }
 0x28b   : > { %v2912_v32 = vpop.eup %2911  ;;  %v1383_v39 = vpop.xlane.xlu0 %1382  ;;  %v1607_v36 = vsub.f32 1.5, %v1606_v53 }
 0x28c   : > { %v1407_v9 = vpop.xlane.xlu2 %1406  ;;  %v2914_v51 = vpop.eup %2913  ;;  %v2034_v8 = vmul.f32 %v2912_v32, %v1931_v20  ;;  %v3999_v61 = vmul.f32 %v3851_v19, %v1383_v39  ;;  %vm2039_vm8 = vweird.f32 %v2912_v32 }
 0x28d   : > { %v1820_v5 = vmul.f32 %v2914_v51, %v3971_v31  ;;  %v4009_v45 = vmul.f32 %v3851_v19, %v1407_v9  ;;  %v1608_v22 = vmul.f32 %v2910_v12, %v1607_v36  ;;  %vm2040_vm12 = vmor %vm2038_vm10, %vm2039_vm8 }
 0x28e   : > { %v2035_v57 = vsub.f32 1.0, %v2034_v8  ;;  %2915 = vrsqrt.f32 %v3999_v61  ;;  %vm1550_vm1 = vcmp.eq.f32.partialorder %v3999_v61, inf  ;;  %vm1552_vm2 = vcmp.eq.f32.partialorder %v3999_v61, 0.0 }
 0x28f   : > { %v1821_v28 = vmul.f32 %v2914_v51, %v1820_v5  ;;  %2917 = vrsqrt.f32 %v4009_v45  ;;  %v1609_v47 = vmul.f32 %v1608_v22, %v3952_v56  ;;  %v4039_v22 = vsub.f32 %v3608_v35, %v1305_v46 }
 0x290   : > { %v2036_v58 = vmul.f32 %v2912_v32, %v2035_v57  ;;  %vm1646_vm3 = vcmp.eq.f32.partialorder %v4009_v45, inf  ;;  %vm1648_vm4 = vcmp.eq.f32.partialorder %v4009_v45, 0.0 }
 0x291   : > { %v1822_v12 = vmul.f32 0.5, %v1821_v28  ;;  %v1611_v6 = vsel %vm1610_vm9, %v3952_v56, %v1609_v47  ;;  %v4035_v56 = vmul.f32 %v3908_v14, %v3738_v21 }
 0x292   : > { %v2037_v24 = vadd.f32 %v2912_v32, %v2036_v58  ;;  %v1614_v41 = vsel %vm1612_vm11, %v1613_v37, %v1611_v6  ;;  %v1829_v58 = vand.u32 2147483648, %v3971_v31  ;;  %v4057_v37 = vmul.f32 %v3908_v14, %v3743_v33 }
 0x293   : > { %v1823_v38 = vsub.f32 1.5, %v1822_v12  ;;  %v1235_v54 = vpop.xlane.xlu0 %1234  ;;  %v1386_v53 = vpop.xlane.xlu1 %1385  ;;  %v4027_v9 = vadd.f32 1e-06, %v1614_v41  ;;  %v4061_v12 = vmul.f32 %v3908_v14, %v3842_v62  ;;  %v4073_v33 = vmul.f32 %v4039_v22, %v4039_v22 }
 0x294   : > { %v2916_v4 = vpop.eup %2915  ;;  %v2041_v39 = vsel %vm2040_vm12, %v2912_v32, %v2037_v24  ;;  %v1296_v8 = vmul.f32 %v3660_v10, %v1235_v54  ;;  %v4031_v36 = vmul.f32 %v3851_v19, %v1386_v53  ;;  %v4082_v54 = vsel %vm440_vm0, %v1370_v50, 0.0 }
 0x295   : > { %v2918_v20 = vpop.eup %2917  ;;  %v2046_v42 = vsel %vm2043_vm13, %v2045_v52, %v2041_v39  ;;  %v1824_v5 = vmul.f32 %v2914_v51, %v1823_v38  ;;  %v1544_v57 = vmul.f32 %v2916_v4, %v3999_v61  ;;  %2919 = vrcp.f32 %v4027_v9 }
 0x296   : > { %v2047_v32 = vmul.f32 %v2046_v42, %v1899_v60  ;;  %v1640_v28 = vmul.f32 %v2918_v20, %v4009_v45  ;;  %v4050_v35 = vsub.f32 %v3760_v7, %v1296_v8  ;;  %2921 = vrsqrt.f32 %v4031_v36 }
 0x297   : > { %v1825_v17 = vmul.f32 %v1824_v5, %v3971_v31  ;;  %v1545_v21 = vmul.f32 %v2916_v4, %v1544_v57  ;;  %v4065_v7 = vmul.f32 %v3908_v14, %v3757_v0  ;;  %v1553_v39 = vand.u32 2147483648, %v3999_v61 }
 0x298   : > { %v2444_v51 = vadd.f32 %v3917_v26, %v2047_v32  ;;  %v1641_v47 = vmul.f32 %v2918_v20, %v1640_v28  ;;  %v1360_v62 = vmul.f32 %v4050_v35, %v4050_v35  ;;  %v2087_v42 = vand.u32 2147483647, %v4027_v9 }
 0x299   : > { %v1827_v60 = vsel %vm1826_vm14, %v3971_v31, %v1825_v17  ;;  %v1546_v46 = vmul.f32 0.5, %v1545_v21  ;;  %v2089_v5 = vand.u32 2147483648, %v4027_v9  ;;  %vm2083_vm6 = vweird.f32 %v4027_v9 }
 0x29a   : > { %2476 = vst.msk [vmem:[%s3929_s27 + $0x28] sm:$0xff] %vm440_vm0, %v2444_v51  ;;  %v1830_v24 = vsel %vm1828_vm15, %v1829_v58, %v1827_v60  ;;  %v1642_v52 = vmul.f32 0.5, %v1641_v47  ;;  %v1432_v50 = vsel %vm440_vm0, %v1360_v62, 0.0  ;;  %vm4098_vm7 = vcmp.eq.f32.partialorder %v2087_v42, 8.507059e+37 }
 0x29b   : > { %v4069_v6 = vadd.f32 1e-06, %v1830_v24  ;;  %v1547_v31 = vsub.f32 1.5, %v1546_v46  ;;  %v1392_v41 = vpop.xlane.xlu0 %1391  ;;  %v2920_v38 = vpop.eup %2919  ;;  %1433 = vadd.xlane.f32.xlu2 %v1432_v50  ;;  %v2090_v62 = vor.u32 1.1754944e-38, %v2089_v5  ;;  %vm1562_vm10 = vcmp.eq.f32.partialorder %v4031_v36, inf }
 0x29c   : > { %v4079_v0 = vmul.f32 %v3851_v19, %v1392_v41  ;;  %v2079_v53 = vmul.f32 %v2920_v38, %v4027_v9  ;;  %v2922_v8 = vpop.eup %2921  ;;  %v1643_v32 = vsub.f32 1.5, %v1642_v52  ;;  %vm2084_vm5 = vweird.f32 %v2920_v38  ;;  %v1416_v46 = vpop.xlane.xlu2 %1415 }
 0x29d   : > { %2923 = vrcp.f32 %v4069_v6  ;;  %v1548_v57 = vmul.f32 %v2916_v4, %v1547_v31  ;;  %v1556_v21 = vmul.f32 %v2922_v8, %v4031_v36  ;;  %v1649_v4 = vand.u32 2147483648, %v4009_v45  ;;  %v1238_v31 = vpop.xlane.xlu1 %1237  ;;  %vm2085_vm8 = vmor %vm2083_vm6, %vm2084_vm5 }
 0x29e   : > { %v2080_v17 = vsub.f32 1.0, %v2079_v53  ;;  %2925 = vrsqrt.f32 %v4079_v0  ;;  %v1644_v51 = vmul.f32 %v2918_v20, %v1643_v32  ;;  %v1297_v5 = vmul.f32 %v3660_v10, %v1238_v31 }
 0x29f   : > { %v1549_v28 = vmul.f32 %v1548_v57, %v3999_v61  ;;  %v1557_v60 = vmul.f32 %v2922_v8, %v1556_v21  ;;  %vm1564_vm11 = vcmp.eq.f32.partialorder %v4031_v36, 0.0  ;;  %vm2353_vm12 = vweird.f32 %v4069_v6 }
 0x2a0   : > { %v2081_v58 = vmul.f32 %v2920_v38, %v2080_v17  ;;  %v1645_v24 = vmul.f32 %v1644_v51, %v4009_v45  ;;  %v4115_v17 = vmul.f32 %v3851_v19, %v1416_v46 }
 0x2a1   : > { %v1551_v20 = vsel %vm1550_vm1, %v3999_v61, %v1549_v28  ;;  %v1558_v57 = vmul.f32 0.5, %v1557_v60  ;;  %vm1586_vm1 = vcmp.eq.f32.partialorder %v4079_v0, inf }
 0x2a2   : > { %v2082_v41 = vadd.f32 %v2920_v38, %v2081_v58  ;;  %v1554_v53 = vsel %vm1552_vm2, %v1553_v39, %v1551_v20  ;;  %v1647_v32 = vsel %vm1646_vm3, %v4009_v45, %v1645_v24  ;;  %v2357_v58 = vand.u32 2147483647, %v4069_v6 }
 0x2a3   : > { %v2924_v52 = vpop.eup %2923  ;;  %v4109_v42 = vadd.f32 1e-06, %v1554_v53  ;;  %v1650_v61 = vsel %vm1648_vm4, %v1649_v4, %v1647_v32  ;;  %v1559_v39 = vsub.f32 1.5, %v1558_v57  ;;  %v4146_v53 = vsub.f32 %v3775_v49, %v1297_v5  ;;  %v1244_v57 = vpop.xlane.xlu0 %1243 }
 0x2a4   : > { %v2349_v9 = vmul.f32 %v2924_v52, %v4069_v6  ;;  %v4117_v21 = vpop.eup %2925  ;;  %v2086_v50 = vsel %vm2085_vm8, %v2920_v38, %v2082_v41  ;;  %vm2354_vm9 = vweird.f32 %v2924_v52  ;;  %v2359_v38 = vand.u32 2147483648, %v4069_v6 }
 0x2a5   : > { %v2091_v28 = vsel %vm4098_vm7, %v2090_v62, %v2086_v50  ;;  %2927 = vrcp.f32 %v4109_v42  ;;  %v4128_v46 = vadd.f32 1e-06, %v1650_v61  ;;  %v1560_v4 = vmul.f32 %v2922_v8, %v1559_v39  ;;  %vm2355_vm13 = vmor %vm2353_vm12, %vm2354_vm9 }
 0x2a6   : > { %v2350_v51 = vsub.f32 1.0, %v2349_v9  ;;  %v2092_v60 = vmul.f32 %v2091_v28, %v3986_v43  ;;  %v1580_v20 = vmul.f32 %v4117_v21, %v4079_v0  ;;  %2929 = vrsqrt.f32 %v4115_v17 }
 0x2a7   : > { %2931 = vrcp.f32 %v4128_v46  ;;  %v2012_v24 = vand.u32 2147483647, %v4109_v42  ;;  %v1565_v8 = vand.u32 2147483648, %v4031_v36  ;;  %v2360_v31 = vor.u32 1.1754944e-38, %v2359_v38 }
 0x2a8   : > { %v2351_v45 = vmul.f32 %v2924_v52, %v2350_v51  ;;  %v2447_v47 = vadd.f32 %v3917_v26, %v2092_v60  ;;  %v1561_v41 = vmul.f32 %v1560_v4, %v4031_v36  ;;  %v1581_v62 = vmul.f32 %v4117_v21, %v1580_v20  ;;  %v1395_v60 = vpop.xlane.xlu1 %1394 }
 0x2a9   : > { %vm2358_vm14 = vcmp.eq.f32.partialorder %v2357_v58, 8.507059e+37  ;;  %vm2008_vm15 = vweird.f32 %v4109_v42  ;;  %v1589_v6 = vand.u32 2147483648, %v4079_v0  ;;  %v2014_v39 = vand.u32 2147483648, %v4109_v42 }
 0x2aa   : > { %v2352_v43 = vadd.f32 %v2924_v52, %v2351_v45  ;;  %2479 = vst.msk [vmem:[%s3929_s27 + $0x40] sm:$0xff] %vm440_vm0, %v2447_v47  ;;  %v1563_v28 = vsel %vm1562_vm10, %v4031_v36, %v1561_v41  ;;  %vm4157_vm2 = vcmp.eq.f32.partialorder %v2012_v24, 8.507059e+37  ;;  %v1582_v58 = vmul.f32 0.5, %v1581_v62 }
 0x2ab   : > { %v2928_v9 = vpop.eup %2927  ;;  %v1566_v51 = vsel %vm1564_vm11, %v1565_v8, %v1563_v28  ;;  %vm1588_vm3 = vcmp.eq.f32.partialorder %v4079_v0, 0.0  ;;  %v1299_v24 = vmul.f32 %v3660_v10, %v1244_v57  ;;  %v2015_v41 = vor.u32 1.1754944e-38, %v2014_v39 }
 0x2ac   : > { %v2356_v32 = vsel %vm2355_vm13, %v2924_v52, %v2352_v43  ;;  %v2004_v61 = vmul.f32 %v2928_v9, %v4109_v42  ;;  %v2930_v49 = vpop.eup %2929  ;;  %v4164_v4 = vadd.f32 1e-06, %v1566_v51  ;;  %v1583_v36 = vsub.f32 1.5, %v1582_v58  ;;  %v1446_v42 = vpop.xlane.xlu0 %1445 }
 0x2ad   : > { %v2361_v50 = vsel %vm2358_vm14, %v2360_v31, %v2356_v32  ;;  %v2932_v38 = vpop.eup %2931  ;;  %v1676_v20 = vmul.f32 %v2930_v49, %v4115_v17  ;;  %vm2009_vm4 = vweird.f32 %v2928_v9  ;;  %v2132_v31 = vand.u32 2147483647, %v4128_v46 }
 0x2ae   : > { %v2362_v5 = vmul.f32 %v2361_v50, %v4003_v1  ;;  %v2005_v45 = vsub.f32 1.0, %v2004_v61  ;;  %v1361_v1 = vmul.f32 %v4146_v53, %v4146_v53  ;;  %v2124_v43 = vmul.f32 %v2932_v38, %v4128_v46  ;;  %vm2010_vm6 = vmor %vm2008_vm15, %vm2009_vm4 }
 0x2af   : > { %2933 = vrcp.f32 %v4164_v4  ;;  %v1584_v32 = vmul.f32 %v4117_v21, %v1583_v36  ;;  %v1677_v50 = vmul.f32 %v2930_v49, %v1676_v20  ;;  %vm2129_vm5 = vweird.f32 %v2932_v38 }
 0x2b0   : > { %v2465_v47 = vadd.f32 %v3917_v26, %v2362_v5  ;;  %v2006_v8 = vmul.f32 %v2928_v9, %v2005_v45  ;;  %v2125_v62 = vsub.f32 1.0, %v2124_v43  ;;  %v2134_v28 = vand.u32 2147483648, %v4128_v46 }
 0x2b1   : > { %v1435_v5 = vsel %vm440_vm0, %v1361_v1, 0.0  ;;  %v1585_v57 = vmul.f32 %v1584_v32, %v4079_v0  ;;  %v1678_v51 = vmul.f32 0.5, %v1677_v50  ;;  %v4183_v58 = vsub.f32 %v3790_v40, %v1299_v24 }
 0x2b2   : > { %2497 = vst.msk [vmem:[%s3929_s27 + $0xd0] sm:$0xff] %vm440_vm0, %v2465_v47  ;;  %v2007_v61 = vadd.f32 %v2928_v9, %v2006_v8  ;;  %v2126_v10 = vmul.f32 %v2932_v38, %v2125_v62  ;;  %1436 = vadd.xlane.f32.xlu0 %v1435_v5  ;;  %vm2128_vm7 = vweird.f32 %v4128_v46  ;;  %vm4186_vm8 = vcmp.eq.f32.partialorder %v2132_v31, 8.507059e+37  ;;  %v1449_v31 = vpop.xlane.xlu1 %1448 }
 0x2b3   : > { %v4191_v45 = vmul.f32 %v3851_v19, %v1395_v60  ;;  %v1587_v40 = vsel %vm1586_vm1, %v4079_v0, %v1585_v57  ;;  %v1679_v47 = vsub.f32 1.5, %v1678_v51  ;;  %vm2130_vm9 = vmor %vm2128_vm7, %vm2129_vm5  ;;  %v2135_v43 = vor.u32 1.1754944e-38, %v2134_v28 }
 0x2b4   : > { %v2011_v39 = vsel %vm2010_vm6, %v2928_v9, %v2007_v61  ;;  %v2127_v1 = vadd.f32 %v2932_v38, %v2126_v10  ;;  %v1590_v60 = vsel %vm1588_vm3, %v1589_v6, %v1587_v40  ;;  %v1363_v8 = vmul.f32 %v4183_v58, %v4183_v58 }
 0x2b5   : > { %v2016_v20 = vsel %vm4157_vm2, %v2015_v41, %v2011_v39  ;;  %v2934_v9 = vpop.eup %2933  ;;  %2935 = vrsqrt.f32 %v4191_v45  ;;  %v4204_v24 = vadd.f32 1e-06, %v1590_v60  ;;  %v1680_v62 = vmul.f32 %v2930_v49, %v1679_v47 }
 0x2b6   : > { %v2017_v46 = vmul.f32 %v2016_v20, %v4057_v37  ;;  %v2131_v52 = vsel %vm2130_vm9, %v2932_v38, %v2127_v1  ;;  %v2019_v36 = vmul.f32 %v2934_v9, %v4164_v4  ;;  %vm1682_vm10 = vcmp.eq.f32.partialorder %v4115_v17, inf  ;;  %v1401_v1 = vpop.xlane.xlu0 %1400 }
 0x2b7   : > { %v2136_v41 = vsel %vm4186_vm8, %v2135_v43, %v2131_v52  ;;  %2937 = vrcp.f32 %v4204_v24  ;;  %v1685_v38 = vand.u32 2147483648, %v4115_v17  ;;  %vm2024_vm11 = vweird.f32 %v2934_v9 }
 0x2b8   : > { %v2442_v37 = vadd.f32 %v3917_v26, %v2017_v46  ;;  %v2137_v0 = vmul.f32 %v2136_v41, %v4035_v56  ;;  %v2020_v6 = vsub.f32 1.0, %v2019_v36  ;;  %v2027_v32 = vand.u32 2147483647, %v4164_v4 }
 0x2b9   : > { %v2029_v50 = vand.u32 2147483648, %v4164_v4  ;;  %v1681_v61 = vmul.f32 %v1680_v62, %v4115_v17  ;;  %v1441_v56 = vsel %vm440_vm0, %v1363_v8, 0.0  ;;  %v4223_v5 = vmul.f32 %v3851_v19, %v1446_v42 }
 0x2ba   : > { %2474 = vst.msk [vmem:[%s3929_s27 + $0x18] sm:$0xff] %vm440_vm0, %v2442_v37  ;;  %v2450_v49 = vadd.f32 %v3917_v26, %v2137_v0  ;;  %v2021_v28 = vmul.f32 %v2934_v9, %v2020_v6  ;;  %1463 = vadd.xlane.f32.xlu0 %v4082_v54  ;;  %vm2023_vm12 = vweird.f32 %v4164_v4  ;;  %vm1684_vm13 = vcmp.eq.f32.partialorder %v4115_v17, 0.0  ;;  %1442 = vadd.xlane.f32.xlu2 %v1441_v56  ;;  %v1404_v36 = vpop.xlane.xlu1 %1403 }
 0x2bb   : > { %v2936_v10 = vpop.eup %2935  ;;  %v1683_v57 = vsel %vm1682_vm10, %v4115_v17, %v1681_v61  ;;  %v4232_v51 = vmul.f32 %v3851_v19, %v1449_v31  ;;  %2939 = vrsqrt.f32 %v4223_v5  ;;  %v4240_v54 = vmul.f32 %v3908_v14, %v3783_v16  ;;  %vm2025_vm14 = vmor %vm2023_vm12, %vm2024_vm11 }
 0x2bc   : > { %2482 = vst.msk [vmem:[%s3929_s27 + $0x58] sm:$0xff] %vm440_vm0, %v2450_v49  ;;  %v2022_v39 = vadd.f32 %v2934_v9, %v2021_v28  ;;  %v1686_v21 = vsel %vm1684_vm13, %v1685_v38, %v1683_v57  ;;  %v1592_v42 = vmul.f32 %v2936_v10, %v4191_v45  ;;  %v2030_v4 = vor.u32 1.1754944e-38, %v2029_v50 }
 0x2bd   : > { %v4243_v17 = vadd.f32 1e-06, %v1686_v21  ;;  %v1459_v20 = vsel %vm440_vm0, %v4073_v33, 0.0  ;;  %v2938_v40 = vpop.eup %2937  ;;  %vm2028_vm15 = vcmp.eq.f32.partialorder %v2027_v32, 8.507059e+37  ;;  %2941 = vrsqrt.f32 %v4232_v51 }
 0x2be   : > { %v2026_v47 = vsel %vm2025_vm14, %v2934_v9, %v2022_v39  ;;  %v1593_v46 = vmul.f32 %v2936_v10, %v1592_v42  ;;  %v4250_v43 = vmul.f32 %v3908_v14, %v3778_v2  ;;  %v2049_v60 = vmul.f32 %v2938_v40, %v4204_v24 }
 0x2bf   : > { %v2031_v16 = vsel %vm2028_vm15, %v2030_v4, %v2026_v47  ;;  %2943 = vrcp.f32 %v4243_v17  ;;  %v4256_v52 = vmul.f32 %v3908_v14, %v3802_v30  ;;  %v4260_v33 = vmul.f32 %v3908_v14, %v3860_v63 }
 0x2c0   : > { %v4264_v9 = vmul.f32 %v3908_v14, %v3815_v55  ;;  %v2032_v2 = vmul.f32 %v2031_v16, %v4065_v7  ;;  %v2050_v8 = vsub.f32 1.0, %v2049_v60  ;;  %v2057_v31 = vand.u32 2147483647, %v4204_v24 }
 0x2c1   : > { %v1594_v37 = vmul.f32 0.5, %v1593_v46  ;;  %vm1598_vm1 = vcmp.eq.f32.partialorder %v4191_v45, inf  ;;  %v2940_v30 = vpop.eup %2939  ;;  %vm2054_vm2 = vweird.f32 %v2938_v40  ;;  %v2059_v63 = vand.u32 2147483648, %v4204_v24 }
 0x2c2   : > { %v2443_v41 = vadd.f32 %v3917_v26, %v2032_v2  ;;  %v4272_v62 = vmul.f32 %v3851_v19, %v1401_v1  ;;  %v2051_v55 = vmul.f32 %v2938_v40, %v2050_v8  ;;  %v1796_v7 = vmul.f32 %v2940_v30, %v4223_v5  ;;  %1460 = vadd.xlane.f32.xlu2 %v1459_v20  ;;  %v1455_v20 = vpop.xlane.xlu0 %1454 }
 0x2c3   : > { %v1595_v0 = vsub.f32 1.5, %v1594_v37  ;;  %v4276_v6 = vmul.f32 %v3851_v19, %v1404_v36  ;;  %v2942_v38 = vpop.eup %2941  ;;  %vm2053_vm3 = vweird.f32 %v4204_v24  ;;  %vm1600_vm4 = vcmp.eq.f32.partialorder %v4191_v45, 0.0 }
 0x2c4   : > { %2475 = vst.msk [vmem:[%s3929_s27 + $0x20] sm:$0xff] %vm440_vm0, %v2443_v41  ;;  %v1601_v32 = vand.u32 2147483648, %v4191_v45  ;;  %2945 = vrsqrt.f32 %v4272_v62  ;;  %v2052_v61 = vadd.f32 %v2938_v40, %v2051_v55  ;;  %v1797_v28 = vmul.f32 %v2940_v30, %v1796_v7  ;;  %vm2055_vm5 = vmor %vm2053_vm3, %vm2054_vm2 }
 0x2c5   : > { %v2944_v50 = vpop.eup %2943  ;;  %v1596_v49 = vmul.f32 %v2936_v10, %v1595_v0  ;;  %v1808_v56 = vmul.f32 %v2942_v38, %v4232_v51  ;;  %vm2058_vm6 = vcmp.eq.f32.partialorder %v2057_v31, 8.507059e+37  ;;  %v2060_v57 = vor.u32 1.1754944e-38, %v2059_v63 }
 0x2c6   : > { %v2169_v39 = vmul.f32 %v2944_v50, %v4243_v17  ;;  %2947 = vrsqrt.f32 %v4276_v6  ;;  %v2056_v24 = vsel %vm2055_vm5, %v2938_v40, %v2052_v61  ;;  %v1798_v42 = vmul.f32 0.5, %v1797_v28 }
 0x2c7   : > { %v1597_v21 = vmul.f32 %v1596_v49, %v4191_v45  ;;  %vm1802_vm7 = vcmp.eq.f32.partialorder %v4223_v5, inf  ;;  %v1809_v4 = vmul.f32 %v2942_v38, %v1808_v56  ;;  %v2061_v10 = vsel %vm2058_vm6, %v2060_v57, %v2056_v24  ;;  %v1458_v49 = vpop.xlane.xlu1 %1457 }
 0x2c8   : > { %v2170_v1 = vsub.f32 1.0, %v2169_v39  ;;  %v2177_v47 = vand.u32 2147483647, %v4243_v17  ;;  %v2179_v46 = vand.u32 2147483648, %v4243_v17  ;;  %vm1804_vm8 = vcmp.eq.f32.partialorder %v4223_v5, 0.0 }
 0x2c9   : > { %v2062_v16 = vmul.f32 %v2061_v10, %v3982_v59  ;;  %v1599_v40 = vsel %vm1598_vm1, %v4191_v45, %v1597_v21  ;;  %v1799_v60 = vsub.f32 1.5, %v1798_v42  ;;  %v1810_v2 = vmul.f32 0.5, %v1809_v4 }
 0x2ca   : > { %v2946_v36 = vpop.eup %2945  ;;  %v2171_v8 = vmul.f32 %v2944_v50, %v2170_v1  ;;  %vm2174_vm9 = vweird.f32 %v2944_v50  ;;  %v1602_v31 = vsel %vm1600_vm4, %v1601_v32, %v1599_v40  ;;  %v4300_v37 = vmul.f32 %v3851_v19, %v1455_v20 }
 0x2cb   : > { %v2445_v41 = vadd.f32 %v3917_v26, %v2062_v16  ;;  %v4303_v63 = vadd.f32 1e-06, %v1602_v31  ;;  %v1800_v59 = vmul.f32 %v2940_v30, %v1799_v60  ;;  %v1811_v55 = vsub.f32 1.5, %v1810_v2 }
 0x2cc   : > { %v2948_v0 = vpop.eup %2947  ;;  %v2172_v7 = vadd.f32 %v2944_v50, %v2171_v8  ;;  %vm2173_vm10 = vweird.f32 %v4243_v17  ;;  %v1616_v61 = vmul.f32 %v2946_v36, %v4272_v62  ;;  %2949 = vrsqrt.f32 %v4300_v37 }
 0x2cd   : > { %2477 = vst.msk [vmem:[%s3929_s27 + $0x30] sm:$0xff] %vm440_vm0, %v2445_v41  ;;  %vm2175_vm11 = vmor %vm2173_vm10, %vm2174_vm9  ;;  %vm2178_vm12 = vcmp.eq.f32.partialorder %v2177_v47, 8.507059e+37  ;;  %v2180_v45 = vor.u32 1.1754944e-38, %v2179_v46  ;;  %2951 = vrcp.f32 %v4303_v63  ;;  %v1805_v32 = vand.u32 2147483648, %v4223_v5 }
 0x2ce   : > { %v2176_v30 = vsel %vm2175_vm11, %v2944_v50, %v2172_v7  ;;  %v1801_v28 = vmul.f32 %v1800_v59, %v4223_v5  ;;  %v1812_v56 = vmul.f32 %v2942_v38, %v1811_v55  ;;  %v1617_v57 = vmul.f32 %v2946_v36, %v1616_v61 }
 0x2cf   : > { %v2181_v17 = vsel %vm2178_vm12, %v2180_v45, %v2176_v30  ;;  %vm1814_vm13 = vcmp.eq.f32.partialorder %v4232_v51, inf  ;;  %v1628_v39 = vmul.f32 %v2948_v0, %v4276_v6  ;;  %v4316_v24 = vmul.f32 %v3851_v19, %v1458_v49 }
 0x2d0   : > { %v2182_v21 = vmul.f32 %v2181_v17, %v4250_v43  ;;  %v1803_v42 = vsel %vm1802_vm7, %v4223_v5, %v1801_v28  ;;  %v1813_v50 = vmul.f32 %v1812_v56, %v4232_v51  ;;  %v1618_v4 = vmul.f32 0.5, %v1617_v57 }
 0x2d1   : > { %v1806_v38 = vsel %vm1804_vm8, %v1805_v32, %v1803_v42  ;;  %vm1816_vm14 = vcmp.eq.f32.partialorder %v4232_v51, 0.0  ;;  %v1817_v20 = vand.u32 2147483648, %v4232_v51  ;;  %v1629_v10 = vmul.f32 %v2948_v0, %v1628_v39 }
 0x2d2   : > { %v4327_v1 = vpop.eup %2949  ;;  %v2453_v43 = vadd.f32 %v3917_v26, %v2182_v21  ;;  %v4330_v47 = vadd.f32 1e-06, %v1806_v38  ;;  %v1815_v46 = vsel %vm1814_vm13, %v4232_v51, %v1813_v50  ;;  %v1619_v16 = vsub.f32 1.5, %v1618_v4 }
 0x2d3   : > { %v2952_v40 = vpop.eup %2951  ;;  %v1818_v60 = vsel %vm1816_vm14, %v1817_v20, %v1815_v46  ;;  %v1630_v2 = vmul.f32 0.5, %v1629_v10  ;;  %v1832_v5 = vmul.f32 %v4327_v1, %v4300_v37  ;;  %2953 = vrsqrt.f32 %v4316_v24  ;;  %v1410_v20 = vpop.xlane.xlu0 %1409 }
 0x2d4   : > { %2485 = vst.msk [vmem:[%s3929_s27 + $0x70] sm:$0xff] %vm440_vm0, %v2453_v43  ;;  %v2064_v8 = vmul.f32 %v2952_v40, %v4303_v63  ;;  %2955 = vrcp.f32 %v4330_v47  ;;  %vm1622_vm15 = vcmp.eq.f32.partialorder %v4272_v62, inf  ;;  %vm1624_vm1 = vcmp.eq.f32.partialorder %v4272_v62, 0.0 }
 0x2d5   : > { %v2072_v51 = vand.u32 2147483647, %v4303_v63  ;;  %v2074_v31 = vand.u32 2147483648, %v4303_v63  ;;  %v4344_v41 = vadd.f32 1e-06, %v1818_v60  ;;  %v1620_v59 = vmul.f32 %v2946_v36, %v1619_v16 }
 0x2d6   : > { %v2065_v55 = vsub.f32 1.0, %v2064_v8  ;;  %v1625_v7 = vand.u32 2147483648, %v4272_v62  ;;  %v1631_v61 = vsub.f32 1.5, %v1630_v2  ;;  %v1833_v49 = vmul.f32 %v4327_v1, %v1832_v5 }
 0x2d7   : > { %2957 = vrcp.f32 %v4344_v41  ;;  %vm1634_vm2 = vcmp.eq.f32.partialorder %v4276_v6, inf  ;;  %vm1636_vm3 = vcmp.eq.f32.partialorder %v4276_v6, 0.0  ;;  %v1637_v45 = vand.u32 2147483648, %v4276_v6 }
 0x2d8   : > { %v2066_v32 = vmul.f32 %v2952_v40, %v2065_v55  ;;  %vm2068_vm4 = vweird.f32 %v4303_v63  ;;  %vm2069_vm5 = vweird.f32 %v2952_v40  ;;  %v1621_v36 = vmul.f32 %v1620_v59, %v4272_v62 }
 0x2d9   : > { %v4354_v30 = vpop.eup %2953  ;;  %vm4356_vm6 = vcmp.eq.f32.partialorder %v2072_v51, 8.507059e+37  ;;  %v2075_v56 = vor.u32 1.1754944e-38, %v2074_v31  ;;  %v1632_v57 = vmul.f32 %v2948_v0, %v1631_v61  ;;  %v1834_v17 = vmul.f32 0.5, %v1833_v49  ;;  %vm2070_vm8 = vmor %vm2068_vm4, %vm2069_vm5 }
 0x2da   : > { %v2956_v39 = vpop.eup %2955  ;;  %v2067_v21 = vadd.f32 %v2952_v40, %v2066_v32  ;;  %vm2323_vm7 = vweird.f32 %v4330_v47  ;;  %v1623_v63 = vsel %vm1622_vm15, %v4272_v62, %v1621_v36  ;;  %v1841_v42 = vand.u32 2147483648, %v4300_v37 }
 0x2db   : > { %v2319_v50 = vmul.f32 %v2956_v39, %v4330_v47  ;;  %v2329_v4 = vand.u32 2147483648, %v4330_v47  ;;  %v1626_v38 = vsel %vm1624_vm1, %v1625_v7, %v1623_v63  ;;  %v1633_v0 = vmul.f32 %v1632_v57, %v4276_v6 }
 0x2dc   : > { %vm1838_vm9 = vcmp.eq.f32.partialorder %v4300_v37, inf  ;;  %v2071_v10 = vsel %vm2070_vm8, %v2952_v40, %v2067_v21  ;;  %v2327_v43 = vand.u32 2147483647, %v4330_v47  ;;  %v4372_v46 = vadd.f32 1e-06, %v1626_v38 }
 0x2dd   : > { %v1835_v16 = vsub.f32 1.5, %v1834_v17  ;;  %v2958_v60 = vpop.eup %2957  ;;  %v2076_v2 = vsel %vm4356_vm6, %v2075_v56, %v2071_v10  ;;  %v2320_v5 = vsub.f32 1.0, %v2319_v50  ;;  %v1635_v62 = vsel %vm1634_vm2, %v4276_v6, %v1633_v0 }
 0x2de   : > { %vm1840_vm10 = vcmp.eq.f32.partialorder %v4300_v37, 0.0  ;;  %v1844_v8 = vmul.f32 %v4354_v30, %v4316_v24  ;;  %v2077_v40 = vmul.f32 %v2076_v2, %v4240_v54  ;;  %v2334_v51 = vmul.f32 %v2958_v60, %v4344_v41 }
 0x2df   : > { %2959 = vrcp.f32 %v4372_v46  ;;  %v4386_v31 = vmul.f32 %v3851_v19, %v1410_v20  ;;  %v2321_v59 = vmul.f32 %v2956_v39, %v2320_v5  ;;  %vm2324_vm11 = vweird.f32 %v2956_v39 }
 0x2e0   : > { %v2330_v55 = vor.u32 1.1754944e-38, %v2329_v4  ;;  %v2342_v7 = vand.u32 2147483647, %v4344_v41  ;;  %v2446_v61 = vadd.f32 %v3917_v26, %v2077_v40  ;;  %v2335_v49 = vsub.f32 1.0, %v2334_v51  ;;  %vm2325_vm13 = vmor %vm2323_vm7, %vm2324_vm11  ;;  %v1413_v51 = vpop.xlane.xlu1 %1412 }
 0x2e1   : > { %v1638_v32 = vsel %vm1636_vm3, %v1637_v45, %v1635_v62  ;;  %v1836_v54 = vmul.f32 %v4327_v1, %v1835_v16  ;;  %v2322_v36 = vadd.f32 %v2956_v39, %v2321_v59  ;;  %vm2339_vm12 = vweird.f32 %v2958_v60 }
 0x2e2   : > { %v2344_v28 = vand.u32 2147483648, %v4344_v41  ;;  %v4394_v56 = vadd.f32 1e-06, %v1638_v32  ;;  %2478 = vst.msk [vmem:[%s3929_s27 + $0x38] sm:$0xff] %vm440_vm0, %v2446_v61  ;;  %v2336_v57 = vmul.f32 %v2958_v60, %v2335_v49  ;;  %v1845_v21 = vmul.f32 %v4354_v30, %v1844_v8  ;;  %v1419_v32 = vpop.xlane.xlu0 %1418 }
 0x2e3   : > { %v1837_v17 = vmul.f32 %v1836_v54, %v4300_v37  ;;  %2961 = vrsqrt.f32 %v4386_v31  ;;  %v2326_v6 = vsel %vm2325_vm13, %v2956_v39, %v2322_v36  ;;  %vm2328_vm14 = vcmp.eq.f32.partialorder %v2327_v43, 8.507059e+37 }
 0x2e4   : > { %vm2338_vm15 = vweird.f32 %v4344_v41  ;;  %2963 = vrcp.f32 %v4394_v56  ;;  %v2331_v45 = vsel %vm2328_vm14, %v2330_v55, %v2326_v6  ;;  %v2337_v63 = vadd.f32 %v2958_v60, %v2336_v57 }
 0x2e5   : > { %v2960_v1 = vpop.eup %2959  ;;  %vm2343_vm1 = vcmp.eq.f32.partialorder %v2342_v7, 8.507059e+37  ;;  %v1839_v47 = vsel %vm1838_vm9, %v4300_v37, %v1837_v17  ;;  %v2332_v50 = vmul.f32 %v2331_v45, %v3990_v13  ;;  %vm2340_vm2 = vmor %vm2338_vm15, %vm2339_vm12  ;;  %v2345_v4 = vor.u32 1.1754944e-38, %v2344_v28 }
 0x2e6   : > { %v2094_v39 = vmul.f32 %v2960_v1, %v4372_v46  ;;  %v2102_v41 = vand.u32 2147483647, %v4372_v46  ;;  %v2341_v38 = vsel %vm2340_vm2, %v2958_v60, %v2337_v63  ;;  %v2104_v0 = vand.u32 2147483648, %v4372_v46 }
 0x2e7   : > { %v1842_v20 = vsel %vm1840_vm10, %v1841_v42, %v1839_v47  ;;  %v1846_v10 = vmul.f32 0.5, %v1845_v21  ;;  %v2463_v43 = vadd.f32 %v3917_v26, %v2332_v50  ;;  %v2346_v16 = vsel %vm2343_vm1, %v2345_v4, %v2341_v38 }
 0x2e8   : > { %v2095_v2 = vsub.f32 1.0, %v2094_v39  ;;  %v4416_v13 = vadd.f32 1e-06, %v1842_v20  ;;  %v4420_v62 = vmul.f32 %v3908_v14, %v3831_v34  ;;  %v2347_v8 = vmul.f32 %v2346_v16, %v4256_v52 }
 0x2e9   : > { %v2962_v5 = vpop.eup %2961  ;;  %v1847_v60 = vsub.f32 1.5, %v1846_v10  ;;  %vm1850_vm3 = vcmp.eq.f32.partialorder %v4316_v24, inf  ;;  %2495 = vst.msk [vmem:[%s3929_s27 + $0xc0] sm:$0xff] %vm440_vm0, %v2463_v43  ;;  %vm2099_vm4 = vweird.f32 %v2960_v1  ;;  %v1853_v42 = vand.u32 2147483648, %v4316_v24 }
 0x2ea   : > { %v2964_v40 = vpop.eup %2963  ;;  %v2096_v37 = vmul.f32 %v2960_v1, %v2095_v2  ;;  %2965 = vrcp.f32 %v4416_v13  ;;  %v2464_v59 = vadd.f32 %v3917_v26, %v2347_v8  ;;  %vm2098_vm5 = vweird.f32 %v4372_v46 }
 0x2eb   : > { %vm4430_vm6 = vcmp.eq.f32.partialorder %v2102_v41, 8.507059e+37  ;;  %v2109_v52 = vmul.f32 %v2964_v40, %v4394_v56  ;;  %v2105_v7 = vor.u32 1.1754944e-38, %v2104_v0  ;;  %v1848_v61 = vmul.f32 %v4354_v30, %v1847_v60  ;;  %vm2100_vm7 = vmor %vm2098_vm5, %vm2099_vm4 }
 0x2ec   : > { %v2097_v55 = vadd.f32 %v2960_v1, %v2096_v37  ;;  %v1652_v49 = vmul.f32 %v2962_v5, %v4386_v31  ;;  %2496 = vst.msk [vmem:[%s3929_s27 + $0xc8] sm:$0xff] %vm440_vm0, %v2464_v59  ;;  %v2117_v36 = vand.u32 2147483647, %v4394_v56  ;;  %v2119_v46 = vand.u32 2147483648, %v4394_v56 }
 0x2ed   : > { %v2110_v54 = vsub.f32 1.0, %v2109_v52  ;;  %v4442_v28 = vmul.f32 %v3851_v19, %v1413_v51  ;;  %vm2114_vm8 = vweird.f32 %v2964_v40  ;;  %v1849_v17 = vmul.f32 %v1848_v61, %v4316_v24 }
 0x2ee   : > { %v2101_v57 = vsel %vm2100_vm7, %v2960_v1, %v2097_v55  ;;  %v1653_v21 = vmul.f32 %v2962_v5, %v1652_v49  ;;  %v4449_v45 = vmul.f32 %v3851_v19, %v1419_v32  ;;  %vm1852_vm9 = vcmp.eq.f32.partialorder %v4316_v24, 0.0 }
 0x2ef   : > { %v2106_v30 = vsel %vm4430_vm6, %v2105_v7, %v2101_v57  ;;  %v2111_v6 = vmul.f32 %v2964_v40, %v2110_v54  ;;  %2967 = vrsqrt.f32 %v4442_v28  ;;  %v1851_v1 = vsel %vm1850_vm3, %v4316_v24, %v1849_v17 }
 0x2f0   : > { %v2966_v63 = vpop.eup %2965  ;;  %v2107_v47 = vmul.f32 %v2106_v30, %v3996_v23  ;;  %v1654_v50 = vmul.f32 0.5, %v1653_v21  ;;  %vm2113_vm10 = vweird.f32 %v4394_v56  ;;  %v1854_v41 = vsel %vm1852_vm9, %v1853_v42, %v1851_v1 }
 0x2f1   : > { %v2112_v4 = vadd.f32 %v2964_v40, %v2111_v6  ;;  %v2364_v39 = vmul.f32 %v2966_v63, %v4416_v13  ;;  %vm2115_vm11 = vmor %vm2113_vm10, %vm2114_vm8  ;;  %v2120_v0 = vor.u32 1.1754944e-38, %v2119_v46  ;;  %v4460_v23 = vadd.f32 1e-06, %v1854_v41 }
 0x2f2   : > { %v2448_v38 = vadd.f32 %v3917_v26, %v2107_v47  ;;  %v1655_v20 = vsub.f32 1.5, %v1654_v50  ;;  %vm2118_vm12 = vcmp.eq.f32.partialorder %v2117_v36, 8.507059e+37  ;;  %2969 = vrsqrt.f32 %v4449_v45 }
 0x2f3   : > { %v2116_v10 = vsel %vm2115_vm11, %v2964_v40, %v2112_v4  ;;  %v2365_v43 = vsub.f32 1.0, %v2364_v39  ;;  %v2372_v56 = vand.u32 2147483647, %v4416_v13  ;;  %v2374_v16 = vand.u32 2147483648, %v4416_v13  ;;  %v1422_v40 = vpop.xlane.xlu1 %1421 }
 0x2f4   : > { %2480 = vst.msk [vmem:[%s3929_s27 + $0x48] sm:$0xff] %vm440_vm0, %v2448_v38  ;;  %v2121_v24 = vsel %vm2118_vm12, %v2120_v0, %v2116_v10  ;;  %2971 = vrcp.f32 %v4460_v23  ;;  %vm2369_vm13 = vweird.f32 %v2966_v63  ;;  %v1656_v37 = vmul.f32 %v2962_v5, %v1655_v20 }
 0x2f5   : > { %v2968_v2 = vpop.eup %2967  ;;  %v2122_v8 = vmul.f32 %v2121_v24, %v4264_v9  ;;  %v2366_v60 = vmul.f32 %v2966_v63, %v2365_v43  ;;  %v4471_v42 = vmul.f32 %v3908_v14, %v3845_v11  ;;  %v4475_v51 = vmul.f32 %v3908_v14, %v3866_v27  ;;  %v1425_v27 = vpop.xlane.xlu2 %1424 }
 0x2f6   : > { %vm1658_vm14 = vcmp.eq.f32.partialorder %v4386_v31, inf  ;;  %v1664_v59 = vmul.f32 %v2968_v2, %v4442_v28  ;;  %vm2368_vm15 = vweird.f32 %v4416_v13  ;;  %v1657_v5 = vmul.f32 %v1656_v37, %v4386_v31 }
 0x2f7   : > { %v2449_v34 = vadd.f32 %v3917_v26, %v2122_v8  ;;  %v2367_v9 = vadd.f32 %v2966_v63, %v2366_v60  ;;  %vm2370_vm1 = vmor %vm2368_vm15, %vm2369_vm13  ;;  %v2375_v52 = vor.u32 1.1754944e-38, %v2374_v16  ;;  %v1661_v11 = vand.u32 2147483648, %v4386_v31 }
 0x2f8   : > { %v1665_v55 = vmul.f32 %v2968_v2, %v1664_v59  ;;  %v4484_v7 = vmul.f32 %v3851_v19, %v1422_v40  ;;  %v2970_v61 = vpop.eup %2969  ;;  %vm2373_vm2 = vcmp.eq.f32.partialorder %v2372_v56, 8.507059e+37  ;;  %v1659_v13 = vsel %vm1658_vm14, %v4386_v31, %v1657_v5 }
 0x2f9   : > { %2481 = vst.msk [vmem:[%s3929_s27 + $0x50] sm:$0xff] %vm440_vm0, %v2449_v34  ;;  %v2371_v49 = vsel %vm2370_vm1, %v2966_v63, %v2367_v9  ;;  %vm1660_vm3 = vcmp.eq.f32.partialorder %v4386_v31, 0.0  ;;  %v1688_v57 = vmul.f32 %v2970_v61, %v4449_v45  ;;  %v4498_v6 = vmul.f32 %v3851_v19, %v1425_v27  ;;  %v1428_v63 = vpop.xlane.xlu0 %1427 }
 0x2fa   : > { %v2972_v32 = vpop.eup %2971  ;;  %v2376_v54 = vsel %vm2373_vm2, %v2375_v52, %v2371_v49  ;;  %v1662_v36 = vsel %vm1660_vm3, %v1661_v11, %v1659_v13  ;;  %v1666_v46 = vmul.f32 0.5, %v1665_v55  ;;  %v4502_v31 = vmul.f32 %v3908_v14, %v3873_v48 }
 0x2fb   : > { %v2377_v17 = vmul.f32 %v2376_v54, %v4013_v25  ;;  %v2379_v21 = vmul.f32 %v2972_v32, %v4460_v23  ;;  %v4495_v30 = vadd.f32 1e-06, %v1662_v36  ;;  %v1689_v1 = vmul.f32 %v2970_v61, %v1688_v57  ;;  %v1431_v60 = vpop.xlane.xlu1 %1430 }
 0x2fc   : > { %v1667_v47 = vsub.f32 1.5, %v1666_v46  ;;  %2973 = vrsqrt.f32 %v4484_v7  ;;  %v2387_v4 = vand.u32 2147483647, %v4460_v23  ;;  %v2389_v39 = vand.u32 2147483648, %v4460_v23 }
 0x2fd   : > { %v2466_v50 = vadd.f32 %v3917_v26, %v2377_v17  ;;  %v2380_v25 = vsub.f32 1.0, %v2379_v21  ;;  %2975 = vrcp.f32 %v4495_v30  ;;  %v1690_v38 = vmul.f32 0.5, %v1689_v1 }
 0x2fe   : > { %v1668_v41 = vmul.f32 %v2968_v2, %v1667_v47  ;;  %v4510_v0 = vmul.f32 %v3851_v19, %v1428_v63  ;;  %vm2384_vm4 = vweird.f32 %v2972_v32  ;;  %vm1670_vm5 = vcmp.eq.f32.partialorder %v4442_v28, inf }
 0x2ff   : > { %2498 = vst.msk [vmem:[%s3929_s27 + $0xd8] sm:$0xff] %vm440_vm0, %v2466_v50  ;;  %v2381_v48 = vmul.f32 %v2972_v32, %v2380_v25  ;;  %2977 = vrsqrt.f32 %v4498_v6  ;;  %vm1672_vm6 = vcmp.eq.f32.partialorder %v4442_v28, 0.0  ;;  %v1673_v10 = vand.u32 2147483648, %v4442_v28 }
 0x300   : > { %v1669_v20 = vmul.f32 %v1668_v41, %v4442_v28  ;;  %v1691_v43 = vsub.f32 1.5, %v1690_v38  ;;  %vm2383_vm7 = vweird.f32 %v4460_v23  ;;  %vm2388_vm8 = vcmp.eq.f32.partialorder %v2387_v4, 8.507059e+37 }
 0x301   : > { %v2382_v24 = vadd.f32 %v2972_v32, %v2381_v48  ;;  %vm1694_vm9 = vcmp.eq.f32.partialorder %v4449_v45, inf  ;;  %vm2385_vm10 = vmor %vm2383_vm7, %vm2384_vm4  ;;  %v2390_v16 = vor.u32 1.1754944e-38, %v2389_v39  ;;  %2979 = vrsqrt.f32 %v4510_v0 }
 0x302   : > { %v2974_v56 = vpop.eup %2973  ;;  %v1671_v2 = vsel %vm1670_vm5, %v4442_v28, %v1669_v20  ;;  %v1692_v8 = vmul.f32 %v2970_v61, %v1691_v43  ;;  %vm1696_vm11 = vcmp.eq.f32.partialorder %v4449_v45, 0.0  ;;  %v1697_v52 = vand.u32 2147483648, %v4449_v45 }
 0x303   : > { %v2976_v37 = vpop.eup %2975  ;;  %v2386_v40 = vsel %vm2385_vm10, %v2972_v32, %v2382_v24  ;;  %v1674_v59 = vsel %vm1672_vm6, %v1673_v10, %v1671_v2  ;;  %v1700_v23 = vmul.f32 %v2974_v56, %v4484_v7  ;;  %v4534_v28 = vmul.f32 %v3851_v19, %v1431_v60 }
 0x304   : > { %v2391_v34 = vsel %vm2388_vm8, %v2390_v16, %v2386_v40  ;;  %v2139_v9 = vmul.f32 %v2976_v37, %v4495_v30  ;;  %v4528_v5 = vadd.f32 1e-06, %v1674_v59  ;;  %v1693_v27 = vmul.f32 %v1692_v8, %v4449_v45  ;;  %v1440_v16 = vpop.xlane.xlu1 %1439 }
 0x305   : > { %v2978_v11 = vpop.eup %2977  ;;  %v2392_v55 = vmul.f32 %v2391_v34, %v4420_v62  ;;  %v1701_v61 = vmul.f32 %v2974_v56, %v1700_v23  ;;  %vm2143_vm12 = vweird.f32 %v4495_v30  ;;  %v2147_v13 = vand.u32 2147483647, %v4495_v30 }
 0x306   : > { %v2140_v49 = vsub.f32 1.0, %v2139_v9  ;;  %2981 = vrcp.f32 %v4528_v5  ;;  %v2149_v54 = vand.u32 2147483648, %v4495_v30  ;;  %v1695_v62 = vsel %vm1694_vm9, %v4449_v45, %v1693_v27 }
 0x307   : > { %v2467_v32 = vadd.f32 %v3917_v26, %v2392_v55  ;;  %v1702_v36 = vmul.f32 0.5, %v1701_v61  ;;  %vm1706_vm13 = vcmp.eq.f32.partialorder %v4484_v7, inf  ;;  %v2980_v46 = vpop.eup %2979  ;;  %vm2144_vm14 = vweird.f32 %v2976_v37 }
 0x308   : > { %v2141_v57 = vmul.f32 %v2976_v37, %v2140_v49  ;;  %v1698_v17 = vsel %vm1696_vm11, %v1697_v52, %v1695_v62  ;;  %v1712_v21 = vmul.f32 %v2978_v11, %v4498_v6  ;;  %vm1708_vm15 = vcmp.eq.f32.partialorder %v4484_v7, 0.0  ;;  %vm2145_vm1 = vmor %vm2143_vm12, %vm2144_vm14 }
 0x309   : > { %2499 = vst.msk [vmem:[%s3929_s27 + $0xe0] sm:$0xff] %vm440_vm0, %v2467_v32  ;;  %v4550_v63 = vadd.f32 1e-06, %v1698_v17  ;;  %v1703_v47 = vsub.f32 1.5, %v1702_v36  ;;  %v1724_v1 = vmul.f32 %v2980_v46, %v4510_v0  ;;  %v1709_v25 = vand.u32 2147483648, %v4484_v7 }
 0x30a   : > { %v2142_v50 = vadd.f32 %v2976_v37, %v2141_v57  ;;  %v1713_v4 = vmul.f32 %v2978_v11, %v1712_v21  ;;  %2983 = vrsqrt.f32 %v4534_v28  ;;  %vm2148_vm2 = vcmp.eq.f32.partialorder %v2147_v13, 8.507059e+37 }
 0x30b   : > { %v2150_v45 = vor.u32 1.1754944e-38, %v2149_v54  ;;  %2985 = vrcp.f32 %v4550_v63  ;;  %v1721_v39 = vand.u32 2147483648, %v4498_v6  ;;  %v1704_v48 = vmul.f32 %v2974_v56, %v1703_v47 }
 0x30c   : > { %v2982_v41 = vpop.eup %2981  ;;  %v2146_v38 = vsel %vm2145_vm1, %v2976_v37, %v2142_v50  ;;  %v1714_v20 = vmul.f32 0.5, %v1713_v4  ;;  %vm1718_vm3 = vcmp.eq.f32.partialorder %v4498_v6, inf  ;;  %v1725_v10 = vmul.f32 %v2980_v46, %v1724_v1 }
 0x30d   : > { %v2151_v43 = vsel %vm2148_vm2, %v2150_v45, %v2146_v38  ;;  %v2154_v24 = vmul.f32 %v2982_v41, %v4528_v5  ;;  %vm2158_vm4 = vweird.f32 %v4528_v5  ;;  %vm1720_vm5 = vcmp.eq.f32.partialorder %v4498_v6, 0.0 }
 0x30e   : > { %v1733_v30 = vand.u32 2147483648, %v4510_v0  ;;  %v2152_v2 = vmul.f32 %v2151_v43, %v4061_v12  ;;  %v2162_v8 = vand.u32 2147483647, %v4528_v5  ;;  %v1705_v56 = vmul.f32 %v1704_v48, %v4484_v7 }
 0x30f   : > { %v1715_v60 = vsub.f32 1.5, %v1714_v20  ;;  %vm1730_vm6 = vcmp.eq.f32.partialorder %v4510_v0, inf  ;;  %v2155_v37 = vsub.f32 1.0, %v2154_v24  ;;  %vm2159_vm7 = vweird.f32 %v2982_v41 }
 0x310   : > { %v2164_v40 = vand.u32 2147483648, %v4528_v5  ;;  %v1726_v59 = vmul.f32 0.5, %v1725_v10  ;;  %v2984_v23 = vpop.eup %2983  ;;  %v2451_v34 = vadd.f32 %v3917_v26, %v2152_v2  ;;  %v1707_v12 = vsel %vm1706_vm13, %v4484_v7, %v1705_v56  ;;  %vm2160_vm9 = vmor %vm2158_vm4, %vm2159_vm7 }
 0x311   : > { %v1716_v9 = vmul.f32 %v2978_v11, %v1715_v60  ;;  %v4575_v52 = vmul.f32 %v3851_v19, %v1440_v16  ;;  %v2986_v55 = vpop.eup %2985  ;;  %v2156_v27 = vmul.f32 %v2982_v41, %v2155_v37  ;;  %v1710_v61 = vsel %vm1708_vm15, %v1709_v25, %v1707_v12  ;;  %v1467_v12 = vpop.xlane.xlu1 %1466 }
 0x312   : > { %v1727_v49 = vsub.f32 1.5, %v1726_v59  ;;  %v1736_v13 = vmul.f32 %v2984_v23, %v4534_v28  ;;  %2483 = vst.msk [vmem:[%s3929_s27 + $0x60] sm:$0xff] %vm440_vm0, %v2451_v34  ;;  %vm4582_vm8 = vcmp.eq.f32.partialorder %v2162_v8, 8.507059e+37  ;;  %v2184_v54 = vmul.f32 %v2986_v55, %v4550_v63 }
 0x313   : > { %v4587_v11 = vadd.f32 1e-06, %v1710_v61  ;;  %v1717_v62 = vmul.f32 %v1716_v9, %v4498_v6  ;;  %v2157_v36 = vadd.f32 %v2982_v41, %v2156_v27  ;;  %v2165_v57 = vor.u32 1.1754944e-38, %v2164_v40 }
 0x314   : > { %v2192_v7 = vand.u32 2147483647, %v4550_v63  ;;  %v1728_v17 = vmul.f32 %v2980_v46, %v1727_v49  ;;  %v2185_v21 = vsub.f32 1.0, %v2184_v54  ;;  %v2194_v47 = vand.u32 2147483648, %v4550_v63 }
 0x315   : > { %2987 = vrcp.f32 %v4587_v11  ;;  %v1737_v1 = vmul.f32 %v2984_v23, %v1736_v13  ;;  %v2161_v50 = vsel %vm2160_vm9, %v2982_v41, %v2157_v36  ;;  %v1719_v25 = vsel %vm1718_vm3, %v4498_v6, %v1717_v62 }
 0x316   : > { %v1729_v4 = vmul.f32 %v1728_v17, %v4510_v0  ;;  %2989 = vrsqrt.f32 %v4575_v52  ;;  %v2166_v46 = vsel %vm4582_vm8, %v2165_v57, %v2161_v50  ;;  %v2186_v5 = vmul.f32 %v2986_v55, %v2185_v21 }
 0x317   : > { %vm2189_vm10 = vweird.f32 %v2986_v55  ;;  %v1722_v45 = vsel %vm1720_vm5, %v1721_v39, %v1719_v25  ;;  %v2167_v38 = vmul.f32 %v2166_v46, %v4471_v42  ;;  %vm1732_vm11 = vcmp.eq.f32.partialorder %v4510_v0, 0.0 }
 0x318   : > { %v4606_v48 = vadd.f32 1e-06, %v1722_v45  ;;  %v1731_v41 = vsel %vm1730_vm6, %v4510_v0, %v1729_v4  ;;  %v2187_v20 = vadd.f32 %v2986_v55, %v2186_v5  ;;  %vm2188_vm12 = vweird.f32 %v4550_v63 }
 0x319   : > { %v1734_v10 = vsel %vm1732_vm11, %v1733_v30, %v1731_v41  ;;  %v1738_v43 = vmul.f32 0.5, %v1737_v1  ;;  %v2452_v24 = vadd.f32 %v3917_v26, %v2167_v38  ;;  %vm2190_vm13 = vmor %vm2188_vm12, %vm2189_vm10  ;;  %vm2193_vm14 = vcmp.eq.f32.partialorder %v2192_v7, 8.507059e+37 }
 0x31a   : > { %v2195_v6 = vor.u32 1.1754944e-38, %v2194_v47  ;;  %2991 = vrcp.f32 %v4606_v48  ;;  %v2191_v39 = vsel %vm2190_vm13, %v2986_v55, %v2187_v20  ;;  %v2207_v16 = vand.u32 2147483647, %v4587_v11 }
 0x31b   : > { %v2988_v42 = vpop.eup %2987  ;;  %v4616_v2 = vadd.f32 1e-06, %v1734_v10  ;;  %v1739_v0 = vsub.f32 1.5, %v1738_v43  ;;  %v4620_v63 = vmul.f32 %v3908_v14, %v3887_v3  ;;  %2484 = vst.msk [vmem:[%s3929_s27 + $0x68] sm:$0xff] %vm440_vm0, %v2452_v24  ;;  %v2209_v60 = vand.u32 2147483648, %v4587_v11  ;;  %v1434_v24 = vpop.xlane.xlu2 %1433 }
 0x31c   : > { %v2990_v8 = vpop.eup %2989  ;;  %v2196_v30 = vsel %vm2193_vm14, %v2195_v6, %v2191_v39  ;;  %v2199_v56 = vmul.f32 %v2988_v42, %v4587_v11  ;;  %vm1742_vm15 = vcmp.eq.f32.partialorder %v4534_v28, inf  ;;  %vm1744_vm1 = vcmp.eq.f32.partialorder %v4534_v28, 0.0 }
 0x31d   : > { %v2197_v37 = vmul.f32 %v2196_v30, %v4260_v33  ;;  %2993 = vrcp.f32 %v4616_v2  ;;  %v2222_v3 = vand.u32 2147483647, %v4606_v48  ;;  %v1740_v59 = vmul.f32 %v2984_v23, %v1739_v0 }
 0x31e   : > { %v2200_v40 = vsub.f32 1.0, %v2199_v56  ;;  %v1745_v34 = vand.u32 2147483648, %v4534_v28  ;;  %vm2203_vm2 = vweird.f32 %v4587_v11  ;;  %vm4634_vm3 = vcmp.eq.f32.partialorder %v2207_v16, 8.507059e+37 }
 0x31f   : > { %v2454_v9 = vadd.f32 %v3917_v26, %v2197_v37  ;;  %v1772_v55 = vmul.f32 %v2990_v8, %v4575_v52  ;;  %vm2204_vm4 = vweird.f32 %v2988_v42  ;;  %v2210_v49 = vor.u32 1.1754944e-38, %v2209_v60 }
 0x320   : > { %v2992_v27 = vpop.eup %2991  ;;  %v2201_v61 = vmul.f32 %v2988_v42, %v2200_v40  ;;  %v1741_v13 = vmul.f32 %v1740_v59, %v4534_v28  ;;  %vm2218_vm5 = vweird.f32 %v4606_v48  ;;  %v4645_v54 = vmul.f32 %v3851_v19, %v1467_v12  ;;  %vm2205_vm8 = vmor %vm2203_vm2, %vm2204_vm4 }
 0x321   : > { %2486 = vst.msk [vmem:[%s3929_s27 + $0x78] sm:$0xff] %vm440_vm0, %v2454_v9  ;;  %v2214_v23 = vmul.f32 %v2992_v27, %v4606_v48  ;;  %v1773_v32 = vmul.f32 %v2990_v8, %v1772_v55  ;;  %vm4647_vm6 = vcmp.eq.f32.partialorder %v2222_v3, 8.507059e+37  ;;  %v2224_v57 = vand.u32 2147483648, %v4606_v48 }
 0x322   : > { %v2202_v62 = vadd.f32 %v2988_v42, %v2201_v61  ;;  %v1743_v7 = vsel %vm1742_vm15, %v4534_v28, %v1741_v13  ;;  %vm1778_vm7 = vcmp.eq.f32.partialorder %v4575_v52, inf  ;;  %2995 = vrsqrt.f32 %v4645_v54 }
 0x323   : > { %v2994_v17 = vpop.eup %2993  ;;  %v2215_v21 = vsub.f32 1.0, %v2214_v23  ;;  %v1746_v47 = vsel %vm1744_vm1, %v1745_v34, %v1743_v7  ;;  %v1774_v1 = vmul.f32 0.5, %v1773_v32  ;;  %v2237_v4 = vand.u32 2147483647, %v4616_v2 }
 0x324   : > { %v2206_v50 = vsel %vm2205_vm8, %v2988_v42, %v2202_v62  ;;  %v2229_v25 = vmul.f32 %v2994_v17, %v4616_v2  ;;  %v4663_v46 = vadd.f32 1e-06, %v1746_v47  ;;  %vm2219_vm9 = vweird.f32 %v2992_v27 }
 0x325   : > { %v2211_v5 = vsel %vm4634_vm3, %v2210_v49, %v2206_v50  ;;  %v2216_v45 = vmul.f32 %v2992_v27, %v2215_v21  ;;  %v1775_v11 = vsub.f32 1.5, %v1774_v1  ;;  %v2225_v28 = vor.u32 1.1754944e-38, %v2224_v57  ;;  %vm2220_vm11 = vmor %vm2218_vm5, %vm2219_vm9  ;;  %v1437_v37 = vpop.xlane.xlu0 %1436 }
 0x326   : > { %v2212_v38 = vmul.f32 %v2211_v5, %v4475_v51  ;;  %v2230_v41 = vsub.f32 1.0, %v2229_v25  ;;  %2997 = vrcp.f32 %v4663_v46  ;;  %vm2233_vm10 = vweird.f32 %v4616_v2 }
 0x327   : > { %v2217_v20 = vadd.f32 %v2992_v27, %v2216_v45  ;;  %v2239_v10 = vand.u32 2147483648, %v4616_v2  ;;  %v1776_v43 = vmul.f32 %v2990_v8, %v1775_v11  ;;  %vm2234_vm12 = vweird.f32 %v2994_v17 }
 0x328   : > { %v2455_v6 = vadd.f32 %v3917_v26, %v2212_v38  ;;  %v2231_v42 = vmul.f32 %v2994_v17, %v2230_v41  ;;  %vm1780_vm13 = vcmp.eq.f32.partialorder %v4575_v52, 0.0  ;;  %v2996_v51 = vpop.eup %2995  ;;  %vm4675_vm14 = vcmp.eq.f32.partialorder %v2237_v4, 8.507059e+37  ;;  %vm2235_vm15 = vmor %vm2233_vm10, %vm2234_vm12 }
 0x329   : > { %v2221_v39 = vsel %vm2220_vm11, %v2992_v27, %v2217_v20  ;;  %v1777_v0 = vmul.f32 %v1776_v43, %v4575_v52  ;;  %v1781_v8 = vand.u32 2147483648, %v4575_v52  ;;  %v1880_v56 = vmul.f32 %v2996_v51, %v4645_v54 }
 0x32a   : > { %2487 = vst.msk [vmem:[%s3929_s27 + $0x80] sm:$0xff] %vm440_vm0, %v2455_v6  ;;  %v2226_v48 = vsel %vm4647_vm6, %v2225_v28, %v2221_v39  ;;  %v2232_v30 = vadd.f32 %v2994_v17, %v2231_v42  ;;  %v4687_v60 = vmul.f32 %v3851_v19, %v1434_v24  ;;  %v2240_v3 = vor.u32 1.1754944e-38, %v2239_v10 }
 0x32b   : > { %v2227_v40 = vmul.f32 %v2226_v48, %v4502_v31  ;;  %v1779_v59 = vsel %vm1778_vm7, %v4575_v52, %v1777_v0  ;;  %v4696_v34 = vmul.f32 %v3851_v19, %v1437_v37  ;;  %v1881_v55 = vmul.f32 %v2996_v51, %v1880_v56 }
 0x32c   : > { %v2998_v12 = vpop.eup %2997  ;;  %v2236_v9 = vsel %vm2235_vm15, %v2994_v17, %v2232_v30  ;;  %v1782_v33 = vsel %vm1780_vm13, %v1781_v8, %v1779_v59  ;;  %2999 = vrsqrt.f32 %v4687_v60  ;;  %v2254_v32 = vand.u32 2147483648, %v4663_v46 }
 0x32d   : > { %v2456_v31 = vadd.f32 %v3917_v26, %v2227_v40  ;;  %v2241_v2 = vsel %vm4675_vm14, %v2240_v3, %v2236_v9  ;;  %v2244_v27 = vmul.f32 %v2998_v12, %v4663_v46  ;;  %v4706_v49 = vadd.f32 1e-06, %v1782_v33  ;;  %v1464_v17 = vpop.xlane.xlu0 %1463  ;;  %v1443_v21 = vpop.xlane.xlu2 %1442 }
 0x32e   : > { %v2242_v61 = vmul.f32 %v2241_v2, %v4620_v63  ;;  %v1882_v13 = vmul.f32 0.5, %v1881_v55  ;;  %3001 = vrsqrt.f32 %v4696_v34  ;;  %vm2249_vm1 = vweird.f32 %v2998_v12 }
 0x32f   : > { %2488 = vst.msk [vmem:[%s3929_s27 + $0x88] sm:$0xff] %vm440_vm0, %v2456_v31  ;;  %v2245_v52 = vsub.f32 1.0, %v2244_v27  ;;  %3003 = vrcp.f32 %v4706_v49  ;;  %v2252_v36 = vand.u32 2147483647, %v4663_v46  ;;  %v1913_v7 = vmul.f32 %v3908_v14, %v3896_v44 }
 0x330   : > { %v2457_v23 = vadd.f32 %v3917_v26, %v2242_v61  ;;  %v1883_v57 = vsub.f32 1.5, %v1882_v13  ;;  %vm2248_vm2 = vweird.f32 %v4663_v46  ;;  %v2255_v25 = vor.u32 1.1754944e-38, %v2254_v32 }
 0x331   : > { %v2246_v62 = vmul.f32 %v2998_v12, %v2245_v52  ;;  %vm2250_vm3 = vmor %vm2248_vm2, %vm2249_vm1  ;;  %vm1886_vm4 = vcmp.eq.f32.partialorder %v4645_v54, inf  ;;  %v1889_v4 = vand.u32 2147483648, %v4645_v54  ;;  %v4724_v5 = vmul.f32 %v3851_v19, %v1464_v17 }
 0x332   : > { %v3000_v63 = vpop.eup %2999  ;;  %2489 = vst.msk [vmem:[%s3929_s27 + $0x90] sm:$0xff] %vm440_vm0, %v2457_v23  ;;  %v1884_v1 = vmul.f32 %v2996_v51, %v1883_v57  ;;  %vm2253_vm5 = vcmp.eq.f32.partialorder %v2252_v36, 8.507059e+37  ;;  %v4730_v20 = vmul.f32 %v3851_v19, %v1443_v21  ;;  %vm1888_vm6 = vcmp.eq.f32.partialorder %v4645_v54, 0.0 }
 0x333   : > { %v2247_v47 = vadd.f32 %v2998_v12, %v2246_v62  ;;  %v1748_v50 = vmul.f32 %v3000_v63, %v4687_v60  ;;  %3005 = vrsqrt.f32 %v4724_v5  ;;  %v1916_v6 = vmul.f32 %v3908_v14, %v3937_v15 }
 0x334   : > { %v3002_v44 = vpop.eup %3001  ;;  %v1885_v11 = vmul.f32 %v1884_v1, %v4645_v54  ;;  %vm1754_vm7 = vcmp.eq.f32.partialorder %v4687_v60, inf  ;;  %v2299_v48 = vand.u32 2147483648, %v4706_v49  ;;  %3007 = vrsqrt.f32 %v4730_v20 }
 0x335   : > { %v2251_v45 = vsel %vm2250_vm3, %v2998_v12, %v2247_v47  ;;  %v1749_v38 = vmul.f32 %v3000_v63, %v1748_v50  ;;  %v3004_v28 = vpop.eup %3003  ;;  %v1760_v41 = vmul.f32 %v3002_v44, %v4696_v34  ;;  %v2297_v15 = vand.u32 2147483647, %v4706_v49  ;;  %v1461_v37 = vpop.xlane.xlu2 %1460 }
 0x336   : > { %v2256_v46 = vsel %vm2253_vm5, %v2255_v25, %v2251_v45  ;;  %v2289_v43 = vmul.f32 %v3004_v28, %v4706_v49  ;;  %v1887_v24 = vsel %vm1886_vm4, %v4645_v54, %v1885_v11  ;;  %vm2294_vm8 = vweird.f32 %v3004_v28 }
 0x337   : > { %v2257_v10 = vmul.f32 %v2256_v46, %v1913_v7  ;;  %v1890_v42 = vsel %vm1888_vm6, %v1889_v4, %v1887_v24  ;;  %v1750_v51 = vmul.f32 0.5, %v1749_v38  ;;  %v1761_v39 = vmul.f32 %v3002_v44, %v1760_v41 }
 0x338   : > { %v2290_v0 = vsub.f32 1.0, %v2289_v43  ;;  %v4738_v8 = vadd.f32 1e-06, %v1890_v42  ;;  %vm1756_vm9 = vcmp.eq.f32.partialorder %v4687_v60, 0.0  ;;  %v1757_v59 = vand.u32 2147483648, %v4687_v60 }
 0x339   : > { %v2458_v16 = vadd.f32 %v3917_v26, %v2257_v10  ;;  %v1751_v30 = vsub.f32 1.5, %v1750_v51  ;;  %v1762_v56 = vmul.f32 0.5, %v1761_v39  ;;  %v3006_v40 = vpop.eup %3005  ;;  %vm2293_vm10 = vweird.f32 %v4706_v49 }
 0x33a   : > { %v2291_v54 = vmul.f32 %v3004_v28, %v2290_v0  ;;  %3009 = vrcp.f32 %v4738_v8  ;;  %vm1766_vm11 = vcmp.eq.f32.partialorder %v4696_v34, inf  ;;  %v1868_v33 = vmul.f32 %v3006_v40, %v4724_v5  ;;  %vm2295_vm12 = vmor %vm2293_vm10, %vm2294_vm8  ;;  %v3008_v23 = vpop.eup %3007 }
 0x33b   : > { %2490 = vst.msk [vmem:[%s3929_s27 + $0x98] sm:$0xff] %vm440_vm0, %v2458_v16  ;;  %v1752_v3 = vmul.f32 %v3000_v63, %v1751_v30  ;;  %v1763_v12 = vsub.f32 1.5, %v1762_v56  ;;  %v2300_v55 = vor.u32 1.1754944e-38, %v2299_v48  ;;  %v4754_v27 = vmul.f32 %v3851_v19, %v1461_v37 }
 0x33c   : > { %v2292_v9 = vadd.f32 %v3004_v28, %v2291_v54  ;;  %vm2298_vm13 = vcmp.eq.f32.partialorder %v2297_v15, 8.507059e+37  ;;  %v1769_v13 = vand.u32 2147483648, %v4696_v34  ;;  %v1869_v52 = vmul.f32 %v3006_v40, %v1868_v33 }
 0x33d   : > { %v1753_v31 = vmul.f32 %v1752_v3, %v4687_v60  ;;  %v1764_v2 = vmul.f32 %v3002_v44, %v1763_v12  ;;  %3011 = vrsqrt.f32 %v4754_v27  ;;  %v1784_v7 = vmul.f32 %v3008_v23, %v4730_v20 }
 0x33e   : > { %v2296_v61 = vsel %vm2295_vm12, %v3004_v28, %v2292_v9  ;;  %v1870_v63 = vmul.f32 0.5, %v1869_v52  ;;  %vm1768_vm14 = vcmp.eq.f32.partialorder %v4696_v34, 0.0  ;;  %v2434_v44 = vand.u32 2147483648, %v4738_v8 }
 0x33f   : > { %v2301_v32 = vsel %vm2298_vm13, %v2300_v55, %v2296_v61  ;;  %v1755_v49 = vsel %vm1754_vm7, %v4687_v60, %v1753_v31  ;;  %v1765_v62 = vmul.f32 %v1764_v2, %v4696_v34  ;;  %v1785_v4 = vmul.f32 %v3008_v23, %v1784_v7 }
 0x340   : > { %v3010_v36 = vpop.eup %3009  ;;  %v2302_v57 = vmul.f32 %v2301_v32, %v1916_v6  ;;  %v1758_v19 = vsel %vm1756_vm9, %v1757_v59, %v1755_v49  ;;  %v1871_v25 = vsub.f32 1.5, %v1870_v63  ;;  %v1925_v41 = vmul.f32 %v3908_v14, %v3946_v29 }
 0x341   : > { %v2424_v17 = vmul.f32 %v3010_v36, %v4738_v8  ;;  %v4766_v21 = vadd.f32 1e-06, %v1758_v19  ;;  %v1767_v47 = vsel %vm1766_vm11, %v4696_v34, %v1765_v62  ;;  %v1786_v38 = vmul.f32 0.5, %v1785_v4 }
 0x342   : > { %v2461_v1 = vadd.f32 %v3917_v26, %v2302_v57  ;;  %v1770_v50 = vsel %vm1768_vm14, %v1769_v13, %v1767_v47  ;;  %v1872_v11 = vmul.f32 %v3006_v40, %v1871_v25  ;;  %vm2429_vm15 = vweird.f32 %v3010_v36 }
 0x343   : > { %v2425_v60 = vsub.f32 1.0, %v2424_v17  ;;  %3013 = vrcp.f32 %v4766_v21  ;;  %v4777_v45 = vadd.f32 1e-06, %v1770_v50  ;;  %v4779_v28 = vpop.eup %3011  ;;  %v2432_v34 = vand.u32 2147483647, %v4738_v8 }
 0x344   : > { %2493 = vst.msk [vmem:[%s3929_s27 + $0xb0] sm:$0xff] %vm440_vm0, %v2461_v1  ;;  %vm1874_vm1 = vcmp.eq.f32.partialorder %v4724_v5, inf  ;;  %vm2428_vm2 = vweird.f32 %v4738_v8  ;;  %v1873_v43 = vmul.f32 %v1872_v11, %v4724_v5  ;;  %v1787_v24 = vsub.f32 1.5, %v1786_v38 }
 0x345   : > { %v2426_v46 = vmul.f32 %v3010_v36, %v2425_v60  ;;  %3015 = vrcp.f32 %v4777_v45  ;;  %vm2430_vm3 = vmor %vm2428_vm2, %vm2429_vm15  ;;  %v2435_v6 = vor.u32 1.1754944e-38, %v2434_v44  ;;  %vm1876_vm4 = vcmp.eq.f32.partialorder %v4724_v5, 0.0 }
 0x346   : > { %v1877_v42 = vand.u32 2147483648, %v4724_v5  ;;  %v1856_v51 = vmul.f32 %v4779_v28, %v4754_v27  ;;  %vm2433_vm5 = vcmp.eq.f32.partialorder %v2432_v34, 8.507059e+37  ;;  %v1875_v16 = vsel %vm1874_vm1, %v4724_v5, %v1873_v43 }
 0x347   : > { %v2427_v10 = vadd.f32 %v3010_v36, %v2426_v46  ;;  %v1788_v0 = vmul.f32 %v3008_v23, %v1787_v24  ;;  %v2269_v30 = vand.u32 2147483648, %v4766_v21  ;;  %vm1790_vm6 = vcmp.eq.f32.partialorder %v4730_v20, inf }
 0x348   : > { %v1878_v56 = vsel %vm1876_vm4, %v1877_v42, %v1875_v16  ;;  %v1857_v40 = vmul.f32 %v4779_v28, %v1856_v51  ;;  %vm1792_vm7 = vcmp.eq.f32.partialorder %v4730_v20, 0.0  ;;  %v1793_v9 = vand.u32 2147483648, %v4730_v20 }
 0x349   : > { %v3014_v29 = vpop.eup %3013  ;;  %v2431_v39 = vsel %vm2430_vm3, %v3010_v36, %v2427_v10  ;;  %v4795_v15 = vadd.f32 1e-06, %v1878_v56  ;;  %v1789_v37 = vmul.f32 %v1788_v0, %v4730_v20  ;;  %vm2263_vm8 = vweird.f32 %v4766_v21 }
 0x34a   : > { %v2436_v48 = vsel %vm2433_vm5, %v2435_v6, %v2431_v39  ;;  %v2259_v8 = vmul.f32 %v3014_v29, %v4766_v21  ;;  %vm2264_vm9 = vweird.f32 %v3014_v29  ;;  %v2267_v55 = vand.u32 2147483647, %v4766_v21 }
 0x34b   : > { %v2437_v54 = vmul.f32 %v2436_v48, %v1925_v41  ;;  %v3016_v3 = vpop.eup %3015  ;;  %3017 = vrcp.f32 %v4795_v15  ;;  %v2270_v31 = vor.u32 1.1754944e-38, %v2269_v30  ;;  %v1791_v61 = vsel %vm1790_vm6, %v4730_v20, %v1789_v37  ;;  %vm2265_vm10 = vmor %vm2263_vm8, %vm2264_vm9 }
 0x34c   : > { %v2260_v59 = vsub.f32 1.0, %v2259_v8  ;;  %v2274_v12 = vmul.f32 %v3016_v3, %v4777_v45  ;;  %v1858_v13 = vmul.f32 0.5, %v1857_v40  ;;  %v2282_v23 = vand.u32 2147483647, %v4777_v45 }
 0x34d   : > { %v2470_v5 = vadd.f32 %v3917_v26, %v2437_v54  ;;  %v2284_v32 = vand.u32 2147483648, %v4777_v45  ;;  %v1794_v49 = vsel %vm1792_vm7, %v1793_v9, %v1791_v61  ;;  %vm2279_vm11 = vweird.f32 %v3016_v3 }
 0x34e   : > { %v2261_v33 = vmul.f32 %v3014_v29, %v2260_v59  ;;  %v2275_v2 = vsub.f32 1.0, %v2274_v12  ;;  %v1949_v36 = vadd.f32 1e-06, %v1794_v49  ;;  %v1859_v57 = vsub.f32 1.5, %v1858_v13 }
 0x34f   : > { %2502 = vst.msk [vmem:[%s3929_s27 + $0xf8] sm:$0xff] %vm440_vm0, %v2470_v5  ;;  %v1914_v19 = vmul.f32 %v3908_v14, %v4050_v35  ;;  %vm2268_vm12 = vcmp.eq.f32.partialorder %v2267_v55, 8.507059e+37  ;;  %vm2278_vm13 = vweird.f32 %v4777_v45  ;;  %v2285_v20 = vor.u32 1.1754944e-38, %v2284_v32 }
 0x350   : > { %v2262_v52 = vadd.f32 %v3014_v29, %v2261_v33  ;;  %v2276_v62 = vmul.f32 %v3016_v3, %v2275_v2  ;;  %3019 = vrcp.f32 %v1949_v36  ;;  %vm2280_vm14 = vmor %vm2278_vm13, %vm2279_vm11  ;;  %v1915_v50 = vmul.f32 %v3908_v14, %v4146_v53 }
 0x351   : > { %v3018_v7 = vpop.eup %3017  ;;  %vm2283_vm15 = vcmp.eq.f32.partialorder %v2282_v23, 8.507059e+37  ;;  %v1860_v35 = vmul.f32 %v4779_v28, %v1859_v57  ;;  %v2419_v45 = vand.u32 2147483648, %v4795_v15  ;;  %vm1862_vm1 = vcmp.eq.f32.partialorder %v4754_v27, inf }
 0x352   : > { %v2266_v63 = vsel %vm2265_vm10, %v3014_v29, %v2262_v52  ;;  %v2277_v21 = vadd.f32 %v3016_v3, %v2276_v62  ;;  %v2409_v1 = vmul.f32 %v3018_v7, %v4795_v15  ;;  %vm2414_vm2 = vweird.f32 %v3018_v7 }
 0x353   : > { %v2271_v17 = vsel %vm2268_vm12, %v2270_v31, %v2266_v63  ;;  %v1861_v38 = vmul.f32 %v1860_v35, %v4754_v27  ;;  %v2417_v53 = vand.u32 2147483647, %v4795_v15  ;;  %v1865_v28 = vand.u32 2147483648, %v4754_v27 }
 0x354   : > { %v2272_v47 = vmul.f32 %v2271_v17, %v1914_v19  ;;  %v2281_v25 = vsel %vm2280_vm14, %v3016_v3, %v2277_v21  ;;  %v2410_v44 = vsub.f32 1.0, %v2409_v1  ;;  %vm1864_vm3 = vcmp.eq.f32.partialorder %v4754_v27, 0.0 }
 0x355   : > { %v2286_v60 = vsel %vm2283_vm15, %v2285_v20, %v2281_v25  ;;  %v1863_v10 = vsel %vm1862_vm1, %v4754_v27, %v1861_v38  ;;  %vm2413_vm4 = vweird.f32 %v4795_v15  ;;  %v2420_v42 = vor.u32 1.1754944e-38, %v2419_v45 }
 0x356   : > { %v2459_v4 = vadd.f32 %v3917_v26, %v2272_v47  ;;  %v2287_v11 = vmul.f32 %v2286_v60, %v1915_v50  ;;  %v2411_v46 = vmul.f32 %v3018_v7, %v2410_v44  ;;  %v3020_v34 = vpop.eup %3019  ;;  %v1866_v6 = vsel %vm1864_vm3, %v1865_v28, %v1863_v10  ;;  %vm2415_vm5 = vmor %vm2413_vm4, %vm2414_vm2 }
 0x357   : > { %v2304_v24 = vmul.f32 %v3020_v34, %v1949_v36  ;;  %v1955_v51 = vadd.f32 1e-06, %v1866_v6  ;;  %v1924_v29 = vmul.f32 %v3908_v14, %v4021_v18  ;;  %vm2418_vm6 = vcmp.eq.f32.partialorder %v2417_v53, 8.507059e+37 }
 0x358   : > { %2491 = vst.msk [vmem:[%s3929_s27 + $0xa0] sm:$0xff] %vm440_vm0, %v2459_v4  ;;  %v2460_v41 = vadd.f32 %v3917_v26, %v2287_v11  ;;  %v2412_v43 = vadd.f32 %v3018_v7, %v2411_v46  ;;  %v2314_v48 = vand.u32 2147483648, %v1949_v36  ;;  %vm2309_vm7 = vweird.f32 %v3020_v34 }
 0x359   : > { %v2305_v16 = vsub.f32 1.0, %v2304_v24  ;;  %3021 = vrcp.f32 %v1955_v51  ;;  %v2312_v30 = vand.u32 2147483647, %v1949_v36  ;;  %vm2308_vm8 = vweird.f32 %v1949_v36 }
 0x35a   : > { %2492 = vst.msk [vmem:[%s3929_s27 + $0xa8] sm:$0xff] %vm440_vm0, %v2460_v41  ;;  %v2416_v39 = vsel %vm2415_vm5, %v3018_v7, %v2412_v43  ;;  %vm2310_vm9 = vmor %vm2308_vm8, %vm2309_vm7  ;;  %v2315_v15 = vor.u32 1.1754944e-38, %v2314_v48  ;;  %v1917_v18 = vmul.f32 %v3908_v14, %v4183_v58  ;;  %v2404_v33 = vand.u32 2147483648, %v1955_v51 }
 0x35b   : > { %v2421_v0 = vsel %vm2418_vm6, %v2420_v42, %v2416_v39  ;;  %v2306_v8 = vmul.f32 %v3020_v34, %v2305_v16  ;;  %vm2313_vm10 = vcmp.eq.f32.partialorder %v2312_v30, 8.507059e+37  ;;  %v2402_v31 = vand.u32 2147483647, %v1955_v51 }
 0x35c   : > { %v2422_v27 = vmul.f32 %v2421_v0, %v1924_v29  ;;  %vm2398_vm12 = vweird.f32 %v1955_v51  ;;  %v2405_v58 = vor.u32 1.1754944e-38, %v2404_v33  ;;  %v1923_v61 = vmul.f32 %v3908_v14, %v4039_v22 }
 0x35d   : > { %v2307_v54 = vadd.f32 %v3020_v34, %v2306_v8  ;;  %vm2403_vm14 = vcmp.eq.f32.partialorder %v2402_v31, 8.507059e+37 }
 0x35e   : > { %v2469_v56 = vadd.f32 %v3917_v26, %v2422_v27 }
 0x35f   : > { %v2311_v37 = vsel %vm2310_vm9, %v3020_v34, %v2307_v54  ;;  %v3022_v40 = vpop.eup %3021 }
 0x360   : > { %2501 = vst.msk [vmem:[%s3929_s27 + $0xf0] sm:$0xff] %vm440_vm0, %v2469_v56  ;;  %v2316_v3 = vsel %vm2313_vm10, %v2315_v15, %v2311_v37  ;;  %v2394_v5 = vmul.f32 %v3022_v40, %v1955_v51  ;;  %vm2399_vm11 = vweird.f32 %v3022_v40 }
 0x361   : > { %v2317_v59 = vmul.f32 %v2316_v3, %v1917_v18  ;;  %vm2400_vm13 = vmor %vm2398_vm12, %vm2399_vm11 }
 0x362   : > { %v2395_v9 = vsub.f32 1.0, %v2394_v5 }
 0x363   : > { %v2462_v12 = vadd.f32 %v3917_v26, %v2317_v59 }
 0x364   : > { %v2396_v55 = vmul.f32 %v3022_v40, %v2395_v9 }
 0x365   : > { %2494 = vst.msk [vmem:[%s3929_s27 + $0xb8] sm:$0xff] %vm440_vm0, %v2462_v12 }
 0x366   : > { %v2397_v2 = vadd.f32 %v3022_v40, %v2396_v55 }
 0x368   : > { %v2401_v13 = vsel %vm2400_vm13, %v3022_v40, %v2397_v2 }
 0x369   : > { %v2406_v52 = vsel %vm2403_vm14, %v2405_v58, %v2401_v13 }
 0x36a   : > { %v2407_v23 = vmul.f32 %v2406_v52, %v1923_v61 }
 0x36c   : > { %v2468_v32 = vadd.f32 %v3917_v26, %v2407_v23 }
 0x36e   : > { %2500 = vst.msk [vmem:[%s3929_s27 + $0xe8] sm:$0xff] %vm440_vm0, %v2468_v32 }
 0x36f PF: > { %s18_s25 = sadd.s32 1, %s3029_s25  }
 0x370   : > { %p15_p4 = scmp.ge.s32.totalorder %s18_s25, 4  }
 0x372   :  { %17 = sbr.rel (!%p15_p4) target bundleno = 3 (0x3), region = 78 }

</bundles_post_ra>
